<compile_context>
chip_gen: v6e
topology: v6e:2x2x1
jax: 0.10.0
libtpu: 0.0.40
codegen_flags: <defaults>
</compile_context>

<pallas_src>
import math
from functools import partial

import jax
import jax.numpy as jnp
from jax import lax
from jax.experimental import pallas as pl
from jax.experimental.pallas import tpu as pltpu


def _cross_attn_kernel(cdt, scene_ref, w_sq_ref, w_q_ref, k_ref, v_ref, ones_ref,
                       w_o_ref, w1_ref, w2_ref, bias_ref, b1_ref, out_ref):
    f32 = jnp.float32

    bd = bias_ref[...].astype(f32)                 # packed (4, D): [b_sq, b_q, b_o, b2]
    b_sq, b_q, b_o, b2 = bd[0:1], bd[1:2], bd[2:3], bd[3:4]
    b1 = b1_ref[...].astype(f32)

    # ---- projections on this row tile (cdt MXU operands, f32 accumulation) ----
    x = scene_ref[...]                                                  # (TM, D) in cdt
    q_scene = jnp.dot(x, w_sq_ref[...], preferred_element_type=f32) + b_sq
    # w_q already has the 1/sqrt(head_dim) softmax scale folded in.
    q_in = jnp.dot(q_scene.astype(cdt), w_q_ref[...],
                   preferred_element_type=f32) + b_q                    # (TM, D)

    # ---- scores for all heads at once against the precomputed block-diag K^T ----
    # Column c = h*bs + s holds head h's score against key s.
    s = lax.dot_general(q_in.astype(cdt), k_ref[...], (((1,), (1,)), ((), ())),
                        preferred_element_type=f32)                     # (TM, H*bs)

    # Segmented softmax over bs-wide segments (one head each).  Subtracting the
    # global row max is algebraically exact per segment; the denominator is clamped
    # so a fully-underflowed head yields zeros rather than inf/NaN.
    s = s - jnp.max(s, axis=-1, keepdims=True)
    e = jnp.exp(s)
    denom = jnp.dot(e.astype(cdt), ones_ref[...], preferred_element_type=f32)
    denom = jnp.maximum(denom, 1e-30)
    r = pl.reciprocal(denom, approx=True)
    r = r * (2.0 - denom * r)                      # one Newton step (cheap VPU FMAs)
    a = e * r

    # context: ctx[m, d] = sum_s a[m, head(d)*bs + s] * v_in[s, d]
    ctx = jnp.dot(a.astype(cdt), v_ref[...], preferred_element_type=f32)       # (TM, D)
    attn_out = jnp.dot(ctx.astype(cdt), w_o_ref[...],
                       preferred_element_type=f32) + b_o
    y = attn_out + q_scene                                                      # residual 1

    # feed_forward: Linear -> Dropout(identity) -> ReLU -> Linear -> Dropout(identity)
    h1 = jnp.maximum(jnp.dot(y.astype(cdt), w1_ref[...],
                             preferred_element_type=f32) + b1, 0.0)
    ff = jnp.dot(h1.astype(cdt), w2_ref[...], preferred_element_type=f32) + b2
    out_ref[...] = (ff + y).astype(out_ref.dtype)                               # residual 2


def _round_up(x, m):
    return ((x + m - 1) // m) * m


def _vmem_capacity_bytes():
    try:
        info = pltpu.get_tpu_info()
        cap = getattr(info, "vmem_capacity_bytes", None)
        if cap:
            return int(cap)
    except Exception:
        pass
    return 64 * 1024 * 1024          # conservative default (v7x per-TC VMEM)


def cross_attention_transformer(scene, phys, params, *, num_heads, target_points,
                                compute_dtype=jnp.bfloat16, max_tile_m=1024):
    bs, P, D = scene.shape
    assert P == target_points and D % num_heads == 0
    head_dim = D // num_heads
    scale = 1.0 / math.sqrt(head_dim)
    M = bs * P
    HB = num_heads * bs
    f32, cdt = jnp.float32, compute_dtype
    out_dtype = scene.dtype

    # Lane-dense padding of the feature axis (no-op when D is a multiple of 128).
    D_pad = _round_up(D, 128)
    pad = D_pad - D

    def pad_cols(a):
        return jnp.pad(a, ((0, 0), (0, pad))) if pad else a

    def pad_rows(a):
        return jnp.pad(a, ((0, pad), (0, 0))) if pad else a

    # ---- trace-time weight fusion + padding (host side, grid-invariant) ----
    w_sq = pad_rows(pad_cols(params["w_sq"])).astype(cdt)
    w_q = pad_rows(pad_cols(params["w_qi"] * scale)).astype(cdt)   # softmax scale folded in
    w_o = pad_rows(pad_cols(params["w_o"])).astype(cdt)
    w1 = pad_rows(params["w1"]).astype(cdt)
    w2 = pad_cols(params["w2"]).astype(cdt)
    F_dim = params["w1"].shape[1]

    bias4 = jnp.concatenate([pad_cols(params["b_sq"]),
                             pad_cols(params["b_qi"] * scale),
                             pad_cols(params["b_o"]),
                             pad_cols(params["b2"])], axis=0).astype(f32)   # (4, D_pad)
    b1 = params["b1"].astype(f32)                                           # (1, F)

    # ---- hoisted (grid-invariant) physics K/V path, done once at trace time ----
    w_k = params["w_pk"] @ params["w_ki"]                   # physics_k folded into k proj
    b_k = params["b_pk"] @ params["w_ki"] + params["b_ki"]
    w_v = params["w_pk"] @ params["w_vi"]                   # physics_k folded into v proj
    b_v = params["b_pk"] @ params["w_vi"] + params["b_vi"]
    k_in = pad_cols(phys.astype(f32) @ w_k + b_k)           # (bs, D_pad)
    v_in = pad_cols(phys.astype(f32) @ w_v + b_v)           # (bs, D_pad)

    # Block-diagonal K^T / V: row r = h*bs + s carries head h's slice of key/value s;
    # padded columns (>= D) belong to no head and stay zero.
    row_head = (jnp.arange(HB) // bs)[:, None]
    col_head = (jnp.arange(D_pad) // head_dim)[None, :]
    head_mask = row_head == col_head
    k_bdt = jnp.where(head_mask, jnp.tile(k_in, (num_heads, 1)), 0.0).astype(cdt)
    v_bd = jnp.where(head_mask, jnp.tile(v_in, (num_heads, 1)), 0.0).astype(cdt)
    seg = jnp.arange(HB) // bs
    block_ones = (seg[:, None] == seg[None, :]).astype(cdt)  # (HB, HB) segment-sum matrix

    # The single streamed input, shipped in compute dtype (halves HBM bytes for bf16).
    scene2 = pad_cols(scene.reshape(M, D)).astype(cdt)

    # ---- per-generation tile / VMEM sizing ----
    vmem_cap = _vmem_capacity_bytes()
    vmem_limit = int(vmem_cap) * 3 // 4            # ~96 MiB on v5e/v6e, ~48 MiB on v7x

    w_item = jnp.dtype(cdt).itemsize
    const_bytes = ((3 * D_pad * D_pad + 2 * D_pad * F_dim + 2 * HB * D_pad + HB * HB)
                   * w_item + (4 * D_pad + F_dim) * 4)

    def est_bytes(tm):
        stream = 2 * tm * D_pad * (w_item + jnp.dtype(out_dtype).itemsize)  # double-buffered
        live = (5 * tm * D_pad + tm * F_dim + 3 * tm * HB) * 4              # f32 intermediates
        return 2 * const_bytes + stream + live     # consts counted double-buffered (worst case)

    # >= 2 grid steps so the "parallel" axis can span both TensorCores on v7x.
    tile_m = min(max_tile_m, _round_up(pl.cdiv(M, 2), 8), _round_up(M, 8))
    while tile_m > 8 and est_bytes(tile_m) > 0.8 * vmem_limit:
        tile_m = _round_up(tile_m // 2, 8)
    grid = (pl.cdiv(M, tile_m),)

    def build_call(single_buffer_consts):
        def const_spec(shape):
            if single_buffer_consts:
                # Constant index map -> a second pipeline buffer is pure VMEM waste.
                return pl.BlockSpec(shape, lambda i: (0, 0), pipeline_mode=pl.Buffered(1))
            return pl.BlockSpec(shape, lambda i: (0, 0))

        return pl.pallas_call(
            partial(_cross_attn_kernel, cdt),
            out_shape=jax.ShapeDtypeStruct((M, D_pad), out_dtype),
            grid=grid,
            in_specs=[
                pl.BlockSpec((tile_m, D_pad), lambda i: (i, 0)),   # scene rows (streamed)
                const_spec((D_pad, D_pad)),                        # w_sq
                const_spec((D_pad, D_pad)),                        # w_q (scaled)
                const_spec((HB, D_pad)),                           # block-diag K^T
                const_spec((HB, D_pad)),                           # block-diag V
                const_spec((HB, HB)),                              # segment-sum ones
                const_spec((D_pad, D_pad)),                        # w_o
                const_spec((D_pad, F_dim)),                        # w1
                const_spec((F_dim, D_pad)),                        # w2
                const_spec((4, D_pad)),                            # packed D-wide biases
                const_spec((1, F_dim)),                            # b1
            ],
            out_specs=pl.BlockSpec((tile_m, D_pad), lambda i: (i, 0)),
            compiler_params=pltpu.CompilerParams(
                dimension_semantics=("parallel",),                 # shard row tiles across TCs
                vmem_limit_bytes=vmem_limit,
            ),
        )

    args = (scene2, w_sq, w_q, k_bdt, v_bd, block_ones, w_o, w1, w2, bias4, b1)
    try:
        out2 = build_call(True)(*args)
    except Exception:
        # pipeline_mode=pl.Buffered(1) unsupported on this jax build: fall back to the
        # default double-buffered constant specs (functionally identical).
        out2 = build_call(False)(*args)

    return out2[:, :D].reshape(bs, P, D)


def init_params(key, scene_dim, physics_dim, ff_dim):
    D, Dp, F = scene_dim, physics_dim, ff_dim
    ks = iter(jax.random.split(key, 16))

    def w(shape):
        return jax.random.normal(next(ks), shape, jnp.float32) * 0.05

    def b(dim):
        return jax.random.normal(next(ks), (1, dim), jnp.float32) * 0.05

    # NOTE: self.physics_v is dead code in the torch forward (value = physics_k),
    # so its parameters are omitted; they do not affect the output.
    return {
        "w_sq": w((D, D)), "b_sq": b(D),     # scene_q
        "w_pk": w((Dp, D)), "b_pk": b(D),    # physics_k
        "w_qi": w((D, D)), "b_qi": b(D),     # MHA in_proj (q)
        "w_ki": w((D, D)), "b_ki": b(D),     # MHA in_proj (k)
        "w_vi": w((D, D)), "b_vi": b(D),     # MHA in_proj (v)
        "w_o":  w((D, D)), "b_o":  b(D),     # MHA out_proj
        "w1": w((D, F)), "b1": b(F),         # feed_forward[0]
        "w2": w((F, D)), "b2": b(D),         # feed_forward[3]
    }


def reference(scene, phys, params, *, num_heads, target_points):
    """Pure-JAX f32 reference mirroring torch semantics (eval mode)."""
    bs, P, D = scene.shape
    hd = D // num_heads
    x = scene.reshape(bs * P, D)
    q_scene = x @ params["w_sq"] + params["b_sq"]
    pk = phys @ params["w_pk"] + params["b_pk"]
    q_in = q_scene @ params["w_qi"] + params["b_qi"]
    k_in = pk @ params["w_ki"] + params["b_ki"]
    v_in = pk @ params["w_vi"] + params["b_vi"]
    scale = 1.0 / math.sqrt(hd)
    q4 = q_in.reshape(bs, P, num_heads, hd)          # (L=bs, N=P, H, hd)
    k3 = k_in.reshape(bs, num_heads, hd)             # key identical across N
    v3 = v_in.reshape(bs, num_heads, hd)
    scores = jnp.einsum('lnhd,shd->lnhs', q4, k3) * scale
    attn = jax.nn.softmax(scores, axis=-1)
    ctx = jnp.einsum('lnhs,shd->lnhd', attn, v3).reshape(bs * P, D)
    attn_out = ctx @ params["w_o"] + params["b_o"]
    y = attn_out + q_scene
    h1 = jnp.maximum(y @ params["w1"] + params["b1"], 0.0)
    ff = h1 @ params["w2"] + params["b2"]
    return (ff + y).reshape(bs, P, D)


if __name__ == "__main__":
    bs, target_points = 2, 8
    scene_dim, physics_dim = 32, 16
    num_heads, ff_dim = 8, 64

    key = jax.random.PRNGKey(0)
    k_scene, k_phys, k_params = jax.random.split(key, 3)
    scene = jax.random.normal(k_scene, (bs, target_points, scene_dim), jnp.float32)
    phys = jax.random.normal(k_phys, (bs, physics_dim), jnp.float32)
    params = init_params(k_params, scene_dim, physics_dim, ff_dim)

    ref = reference(scene, phys, params, num_heads=num_heads,
                    target_points=target_points)

    # f32 compute path: tight check of kernel semantics.
    out_f32 = cross_attention_transformer(scene, phys, params,
                                          num_heads=num_heads,
                                          target_points=target_points,
                                          compute_dtype=jnp.float32)
    out_f32 = jax.block_until_ready(out_f32)
    assert out_f32.shape == (bs, target_points, scene_dim)
    err_f32 = float(jnp.max(jnp.abs(out_f32 - ref)))
    assert err_f32 < 2e-3, f"f32 kernel mismatch vs reference: {err_f32}"

    # bf16-MXU path (default): f32 accumulation keeps it close to the f32 reference.
    out_bf16 = cross_attention_transformer(scene, phys, params,
                                           num_heads=num_heads,
                                           target_points=target_points)
    out_bf16 = jax.block_until_ready(out_bf16)
    err_bf16 = float(jnp.max(jnp.abs(out_bf16 - ref)))
    assert err_bf16 < 2e-2, f"bf16 kernel mismatch vs reference: {err_bf16}"

    print("KERNEL_OK")
</pallas_src>

<mosaic_0001>
module attributes {stable_mosaic.version = 11 : i64} {
  func.func @_cross_attn_kernel(%arg0: i32, %arg1: memref<8x128xf32, #tpu.memory_space<vmem>>, %arg2: memref<128x128xf32, #tpu.memory_space<vmem>>, %arg3: memref<128x128xf32, #tpu.memory_space<vmem>>, %arg4: memref<16x128xf32, #tpu.memory_space<vmem>>, %arg5: memref<16x128xf32, #tpu.memory_space<vmem>>, %arg6: memref<16x16xf32, #tpu.memory_space<vmem>>, %arg7: memref<128x128xf32, #tpu.memory_space<vmem>>, %arg8: memref<128x64xf32, #tpu.memory_space<vmem>>, %arg9: memref<64x128xf32, #tpu.memory_space<vmem>>, %arg10: memref<4x128xf32, #tpu.memory_space<vmem>>, %arg11: memref<1x64xf32, #tpu.memory_space<vmem>>, %arg12: memref<8x128xf32, #tpu.memory_space<vmem>>) attributes {dimension_semantics = [#tpu.dimension_semantics<parallel>], iteration_bounds = array<i64: 2>, scalar_prefetch = 0 : i64, scratch_operands = 0 : i64, tpu.core_type = #tpu.core_type<tc>, window_params = [{transform_indices = @transform_0, window_bounds = array<i64: 8, 128>}, {pipeline_mode = #tpu.pipeline_mode<synchronous>, transform_indices = @transform_1, window_bounds = array<i64: 128, 128>}, {pipeline_mode = #tpu.pipeline_mode<synchronous>, transform_indices = @transform_2, window_bounds = array<i64: 128, 128>}, {pipeline_mode = #tpu.pipeline_mode<synchronous>, transform_indices = @transform_3, window_bounds = array<i64: 16, 128>}, {pipeline_mode = #tpu.pipeline_mode<synchronous>, transform_indices = @transform_4, window_bounds = array<i64: 16, 128>}, {pipeline_mode = #tpu.pipeline_mode<synchronous>, transform_indices = @transform_5, window_bounds = array<i64: 16, 16>}, {pipeline_mode = #tpu.pipeline_mode<synchronous>, transform_indices = @transform_6, window_bounds = array<i64: 128, 128>}, {pipeline_mode = #tpu.pipeline_mode<synchronous>, transform_indices = @transform_7, window_bounds = array<i64: 128, 64>}, {pipeline_mode = #tpu.pipeline_mode<synchronous>, transform_indices = @transform_8, window_bounds = array<i64: 64, 128>}, {pipeline_mode = #tpu.pipeline_mode<synchronous>, transform_indices = @transform_9, window_bounds = array<i64: 4, 128>}, {pipeline_mode = #tpu.pipeline_mode<synchronous>, transform_indices = @transform_10, window_bounds = array<i64: 1, 64>}, {transform_indices = @transform_11, window_bounds = array<i64: 8, 128>}]} {
    %c0 = arith.constant 0 : index
    %c0_0 = arith.constant 0 : index
    %0 = vector.load %arg10[%c0, %c0_0] : memref<4x128xf32, #tpu.memory_space<vmem>>, vector<4x128xf32>
    %1 = vector.extract_strided_slice %0 {offsets = [0, 0], sizes = [1, 128], strides = [1, 1]} : vector<4x128xf32> to vector<1x128xf32>
    %2 = vector.extract_strided_slice %0 {offsets = [1, 0], sizes = [1, 128], strides = [1, 1]} : vector<4x128xf32> to vector<1x128xf32>
    %3 = vector.extract_strided_slice %0 {offsets = [2, 0], sizes = [1, 128], strides = [1, 1]} : vector<4x128xf32> to vector<1x128xf32>
    %4 = vector.extract_strided_slice %0 {offsets = [3, 0], sizes = [1, 128], strides = [1, 1]} : vector<4x128xf32> to vector<1x128xf32>
    %c0_1 = arith.constant 0 : index
    %c0_2 = arith.constant 0 : index
    %5 = vector.load %arg11[%c0_1, %c0_2] : memref<1x64xf32, #tpu.memory_space<vmem>>, vector<1x64xf32>
    %c0_3 = arith.constant 0 : index
    %c0_4 = arith.constant 0 : index
    %6 = vector.load %arg1[%c0_3, %c0_4] : memref<8x128xf32, #tpu.memory_space<vmem>>, vector<8x128xf32>
    %c0_5 = arith.constant 0 : index
    %c0_6 = arith.constant 0 : index
    %7 = vector.load %arg2[%c0_5, %c0_6] : memref<128x128xf32, #tpu.memory_space<vmem>>, vector<128x128xf32>
    %cst = arith.constant dense<0.000000e+00> : vector<8x128xf32>
    %8 = tpu.matmul %6, %7, %cst {dimension_numbers = #tpu.dot_dimension_numbers<[1], [0], [0], [1], [0, 0, 1, 1], [], []>} : vector<8x128xf32>, vector<128x128xf32>, vector<8x128xf32> -> vector<8x128xf32>
    %9 = vector.broadcast %1 : vector<1x128xf32> to vector<8x128xf32>
    %10 = arith.addf %8, %9 : vector<8x128xf32>
    %c0_7 = arith.constant 0 : index
    %c0_8 = arith.constant 0 : index
    %11 = vector.load %arg3[%c0_7, %c0_8] : memref<128x128xf32, #tpu.memory_space<vmem>>, vector<128x128xf32>
    %cst_9 = arith.constant dense<0.000000e+00> : vector<8x128xf32>
    %12 = tpu.matmul %10, %11, %cst_9 {dimension_numbers = #tpu.dot_dimension_numbers<[1], [0], [0], [1], [0, 0, 1, 1], [], []>} : vector<8x128xf32>, vector<128x128xf32>, vector<8x128xf32> -> vector<8x128xf32>
    %13 = vector.broadcast %2 : vector<1x128xf32> to vector<8x128xf32>
    %14 = arith.addf %12, %13 : vector<8x128xf32>
    %c0_10 = arith.constant 0 : index
    %c0_11 = arith.constant 0 : index
    %15 = vector.load %arg4[%c0_10, %c0_11] : memref<16x128xf32, #tpu.memory_space<vmem>>, vector<16x128xf32>
    %cst_12 = arith.constant dense<0.000000e+00> : vector<8x16xf32>
    %16 = tpu.matmul %14, %15, %cst_12 {dimension_numbers = #tpu.dot_dimension_numbers<[1], [1], [0], [0], [0, 0, 1, 0], [], []>} : vector<8x128xf32>, vector<16x128xf32>, vector<8x16xf32> -> vector<8x16xf32>
    %cst_13 = arith.constant dense<0xFF800000> : vector<8xf32>
    %17 = vector.multi_reduction <maximumf>, %16, %cst_13 [1] : vector<8x16xf32> to vector<8xf32>
    %18 = vector.shape_cast %17 : vector<8xf32> to vector<8x1xf32>
    %19 = vector.broadcast %18 : vector<8x1xf32> to vector<8x16xf32>
    %20 = arith.subf %16, %19 : vector<8x16xf32>
    %21 = math.exp %20 : vector<8x16xf32>
    %c0_14 = arith.constant 0 : index
    %c0_15 = arith.constant 0 : index
    %22 = vector.load %arg6[%c0_14, %c0_15] : memref<16x16xf32, #tpu.memory_space<vmem>>, vector<16x16xf32>
    %cst_16 = arith.constant dense<0.000000e+00> : vector<8x16xf32>
    %23 = tpu.matmul %21, %22, %cst_16 {dimension_numbers = #tpu.dot_dimension_numbers<[1], [0], [0], [1], [0, 0, 1, 1], [], []>} : vector<8x16xf32>, vector<16x16xf32>, vector<8x16xf32> -> vector<8x16xf32>
    %cst_17 = arith.constant 1.000000e-30 : f32
    %24 = vector.broadcast %cst_17 : f32 to vector<8x16xf32>
    %25 = arith.maximumf %23, %24 : vector<8x16xf32>
    %26 = tpu.reciprocal %25 {approx = true} : vector<8x16xf32> -> vector<8x16xf32>
    %27 = arith.mulf %25, %26 : vector<8x16xf32>
    %cst_18 = arith.constant 2.000000e+00 : f32
    %28 = vector.broadcast %cst_18 : f32 to vector<8x16xf32>
    %29 = arith.subf %28, %27 : vector<8x16xf32>
    %30 = arith.mulf %26, %29 : vector<8x16xf32>
    %31 = arith.mulf %21, %30 : vector<8x16xf32>
    %c0_19 = arith.constant 0 : index
    %c0_20 = arith.constant 0 : index
    %32 = vector.load %arg5[%c0_19, %c0_20] : memref<16x128xf32, #tpu.memory_space<vmem>>, vector<16x128xf32>
    %cst_21 = arith.constant dense<0.000000e+00> : vector<8x128xf32>
    %33 = tpu.matmul %31, %32, %cst_21 {dimension_numbers = #tpu.dot_dimension_numbers<[1], [0], [0], [1], [0, 0, 1, 1], [], []>} : vector<8x16xf32>, vector<16x128xf32>, vector<8x128xf32> -> vector<8x128xf32>
    %c0_22 = arith.constant 0 : index
    %c0_23 = arith.constant 0 : index
    %34 = vector.load %arg7[%c0_22, %c0_23] : memref<128x128xf32, #tpu.memory_space<vmem>>, vector<128x128xf32>
    %cst_24 = arith.constant dense<0.000000e+00> : vector<8x128xf32>
    %35 = tpu.matmul %33, %34, %cst_24 {dimension_numbers = #tpu.dot_dimension_numbers<[1], [0], [0], [1], [0, 0, 1, 1], [], []>} : vector<8x128xf32>, vector<128x128xf32>, vector<8x128xf32> -> vector<8x128xf32>
    %36 = vector.broadcast %3 : vector<1x128xf32> to vector<8x128xf32>
    %37 = arith.addf %35, %36 : vector<8x128xf32>
    %38 = arith.addf %37, %10 : vector<8x128xf32>
    %c0_25 = arith.constant 0 : index
    %c0_26 = arith.constant 0 : index
    %39 = vector.load %arg8[%c0_25, %c0_26] : memref<128x64xf32, #tpu.memory_space<vmem>>, vector<128x64xf32>
    %cst_27 = arith.constant dense<0.000000e+00> : vector<8x64xf32>
    %40 = tpu.matmul %38, %39, %cst_27 {dimension_numbers = #tpu.dot_dimension_numbers<[1], [0], [0], [1], [0, 0, 1, 1], [], []>} : vector<8x128xf32>, vector<128x64xf32>, vector<8x64xf32> -> vector<8x64xf32>
    %41 = vector.broadcast %5 : vector<1x64xf32> to vector<8x64xf32>
    %42 = arith.addf %40, %41 : vector<8x64xf32>
    %cst_28 = arith.constant 0.000000e+00 : f32
    %43 = vector.broadcast %cst_28 : f32 to vector<8x64xf32>
    %44 = arith.maximumf %42, %43 : vector<8x64xf32>
    %c0_29 = arith.constant 0 : index
    %c0_30 = arith.constant 0 : index
    %45 = vector.load %arg9[%c0_29, %c0_30] : memref<64x128xf32, #tpu.memory_space<vmem>>, vector<64x128xf32>
    %cst_31 = arith.constant dense<0.000000e+00> : vector<8x128xf32>
    %46 = tpu.matmul %44, %45, %cst_31 {dimension_numbers = #tpu.dot_dimension_numbers<[1], [0], [0], [1], [0, 0, 1, 1], [], []>} : vector<8x64xf32>, vector<64x128xf32>, vector<8x128xf32> -> vector<8x128xf32>
    %47 = vector.broadcast %4 : vector<1x128xf32> to vector<8x128xf32>
    %48 = arith.addf %46, %47 : vector<8x128xf32>
    %49 = arith.addf %48, %38 : vector<8x128xf32>
    %c0_32 = arith.constant 0 : index
    %c0_33 = arith.constant 0 : index
    %50 = vector.load %arg12[%c0_32, %c0_33] : memref<8x128xf32, #tpu.memory_space<vmem>>, vector<8x128xf32>
    tpu.vector_store %arg12[%c0_32, %c0_33], %49 {strides = array<i32>} : memref<8x128xf32, #tpu.memory_space<vmem>>, vector<8x128xf32>,
    return
  }
  func.func @transform_0(%arg0: i32) -> (i32, i32) {
    %c0_i32 = arith.constant 0 : i32
    %c0_i32_0 = arith.constant 0 : i32
    return %arg0, %c0_i32 : i32, i32
  }
  func.func @transform_1(%arg0: i32) -> (i32, i32) {
    %c0_i32 = arith.constant 0 : i32
    %c0_i32_0 = arith.constant 0 : i32
    %c0_i32_1 = arith.constant 0 : i32
    return %c0_i32, %c0_i32_0 : i32, i32
  }
  func.func @transform_2(%arg0: i32) -> (i32, i32) {
    %c0_i32 = arith.constant 0 : i32
    %c0_i32_0 = arith.constant 0 : i32
    %c0_i32_1 = arith.constant 0 : i32
    return %c0_i32, %c0_i32_0 : i32, i32
  }
  func.func @transform_3(%arg0: i32) -> (i32, i32) {
    %c0_i32 = arith.constant 0 : i32
    %c0_i32_0 = arith.constant 0 : i32
    %c0_i32_1 = arith.constant 0 : i32
    return %c0_i32, %c0_i32_0 : i32, i32
  }
  func.func @transform_4(%arg0: i32) -> (i32, i32) {
    %c0_i32 = arith.constant 0 : i32
    %c0_i32_0 = arith.constant 0 : i32
    %c0_i32_1 = arith.constant 0 : i32
    return %c0_i32, %c0_i32_0 : i32, i32
  }
  func.func @transform_5(%arg0: i32) -> (i32, i32) {
    %c0_i32 = arith.constant 0 : i32
    %c0_i32_0 = arith.constant 0 : i32
    %c0_i32_1 = arith.constant 0 : i32
    return %c0_i32, %c0_i32_0 : i32, i32
  }
  func.func @transform_6(%arg0: i32) -> (i32, i32) {
    %c0_i32 = arith.constant 0 : i32
    %c0_i32_0 = arith.constant 0 : i32
    %c0_i32_1 = arith.constant 0 : i32
    return %c0_i32, %c0_i32_0 : i32, i32
  }
  func.func @transform_7(%arg0: i32) -> (i32, i32) {
    %c0_i32 = arith.constant 0 : i32
    %c0_i32_0 = arith.constant 0 : i32
    %c0_i32_1 = arith.constant 0 : i32
    return %c0_i32, %c0_i32_0 : i32, i32
  }
  func.func @transform_8(%arg0: i32) -> (i32, i32) {
    %c0_i32 = arith.constant 0 : i32
    %c0_i32_0 = arith.constant 0 : i32
    %c0_i32_1 = arith.constant 0 : i32
    return %c0_i32, %c0_i32_0 : i32, i32
  }
  func.func @transform_9(%arg0: i32) -> (i32, i32) {
    %c0_i32 = arith.constant 0 : i32
    %c0_i32_0 = arith.constant 0 : i32
    %c0_i32_1 = arith.constant 0 : i32
    return %c0_i32, %c0_i32_0 : i32, i32
  }
  func.func @transform_10(%arg0: i32) -> (i32, i32) {
    %c0_i32 = arith.constant 0 : i32
    %c0_i32_0 = arith.constant 0 : i32
    %c0_i32_1 = arith.constant 0 : i32
    return %c0_i32, %c0_i32_0 : i32, i32
  }
  func.func @transform_11(%arg0: i32) -> (i32, i32) {
    %c0_i32 = arith.constant 0 : i32
    %c0_i32_0 = arith.constant 0 : i32
    return %arg0, %c0_i32 : i32, i32
  }
}

module attributes {stable_mosaic.version = 11 : i64} {
  func.func @_cross_attn_kernel(%arg0: i32, %arg1: memref<8x128xf32, #tpu.memory_space<vmem>>, %arg2: memref<128x128xf32, #tpu.memory_space<vmem>>, %arg3: memref<128x128xf32, #tpu.memory_space<vmem>>, %arg4: memref<16x128xf32, #tpu.memory_space<vmem>>, %arg5: memref<16x128xf32, #tpu.memory_space<vmem>>, %arg6: memref<16x16xf32, #tpu.memory_space<vmem>>, %arg7: memref<128x128xf32, #tpu.memory_space<vmem>>, %arg8: memref<128x64xf32, #tpu.memory_space<vmem>>, %arg9: memref<64x128xf32, #tpu.memory_space<vmem>>, %arg10: memref<4x128xf32, #tpu.memory_space<vmem>>, %arg11: memref<1x64xf32, #tpu.memory_space<vmem>>, %arg12: memref<8x128xf32, #tpu.memory_space<vmem>>) attributes {dimension_semantics = [#tpu.dimension_semantics<parallel>], iteration_bounds = array<i64: 2>, scalar_prefetch = 0 : i64, scratch_operands = 0 : i64, tpu.core_type = #tpu.core_type<tc>, window_params = [{transform_indices = @transform_0, window_bounds = array<i64: 8, 128>}, {pipeline_mode = #tpu.pipeline_mode<synchronous>, transform_indices = @transform_1, window_bounds = array<i64: 128, 128>}, {pipeline_mode = #tpu.pipeline_mode<synchronous>, transform_indices = @transform_2, window_bounds = array<i64: 128, 128>}, {pipeline_mode = #tpu.pipeline_mode<synchronous>, transform_indices = @transform_3, window_bounds = array<i64: 16, 128>}, {pipeline_mode = #tpu.pipeline_mode<synchronous>, transform_indices = @transform_4, window_bounds = array<i64: 16, 128>}, {pipeline_mode = #tpu.pipeline_mode<synchronous>, transform_indices = @transform_5, window_bounds = array<i64: 16, 16>}, {pipeline_mode = #tpu.pipeline_mode<synchronous>, transform_indices = @transform_6, window_bounds = array<i64: 128, 128>}, {pipeline_mode = #tpu.pipeline_mode<synchronous>, transform_indices = @transform_7, window_bounds = array<i64: 128, 64>}, {pipeline_mode = #tpu.pipeline_mode<synchronous>, transform_indices = @transform_8, window_bounds = array<i64: 64, 128>}, {pipeline_mode = #tpu.pipeline_mode<synchronous>, transform_indices = @transform_9, window_bounds = array<i64: 4, 128>}, {pipeline_mode = #tpu.pipeline_mode<synchronous>, transform_indices = @transform_10, window_bounds = array<i64: 1, 64>}, {transform_indices = @transform_11, window_bounds = array<i64: 8, 128>}]} {
    %c0 = arith.constant 0 : index
    %c0_0 = arith.constant 0 : index
    %0 = vector.load %arg10[%c0, %c0_0] : memref<4x128xf32, #tpu.memory_space<vmem>>, vector<4x128xf32>
    %1 = vector.extract_strided_slice %0 {offsets = [0, 0], sizes = [1, 128], strides = [1, 1]} : vector<4x128xf32> to vector<1x128xf32>
    %2 = vector.extract_strided_slice %0 {offsets = [1, 0], sizes = [1, 128], strides = [1, 1]} : vector<4x128xf32> to vector<1x128xf32>
    %3 = vector.extract_strided_slice %0 {offsets = [2, 0], sizes = [1, 128], strides = [1, 1]} : vector<4x128xf32> to vector<1x128xf32>
    %4 = vector.extract_strided_slice %0 {offsets = [3, 0], sizes = [1, 128], strides = [1, 1]} : vector<4x128xf32> to vector<1x128xf32>
    %c0_1 = arith.constant 0 : index
    %c0_2 = arith.constant 0 : index
    %5 = vector.load %arg11[%c0_1, %c0_2] : memref<1x64xf32, #tpu.memory_space<vmem>>, vector<1x64xf32>
    %c0_3 = arith.constant 0 : index
    %c0_4 = arith.constant 0 : index
    %6 = vector.load %arg1[%c0_3, %c0_4] : memref<8x128xf32, #tpu.memory_space<vmem>>, vector<8x128xf32>
    %c0_5 = arith.constant 0 : index
    %c0_6 = arith.constant 0 : index
    %7 = vector.load %arg2[%c0_5, %c0_6] : memref<128x128xf32, #tpu.memory_space<vmem>>, vector<128x128xf32>
    %cst = arith.constant dense<0.000000e+00> : vector<8x128xf32>
    %8 = tpu.matmul %6, %7, %cst {dimension_numbers = #tpu.dot_dimension_numbers<[1], [0], [0], [1], [0, 0, 1, 1], [], []>} : vector<8x128xf32>, vector<128x128xf32>, vector<8x128xf32> -> vector<8x128xf32>
    %9 = vector.broadcast %1 : vector<1x128xf32> to vector<8x128xf32>
    %10 = arith.addf %8, %9 : vector<8x128xf32>
    %c0_7 = arith.constant 0 : index
    %c0_8 = arith.constant 0 : index
    %11 = vector.load %arg3[%c0_7, %c0_8] : memref<128x128xf32, #tpu.memory_space<vmem>>, vector<128x128xf32>
    %cst_9 = arith.constant dense<0.000000e+00> : vector<8x128xf32>
    %12 = tpu.matmul %10, %11, %cst_9 {dimension_numbers = #tpu.dot_dimension_numbers<[1], [0], [0], [1], [0, 0, 1, 1], [], []>} : vector<8x128xf32>, vector<128x128xf32>, vector<8x128xf32> -> vector<8x128xf32>
    %13 = vector.broadcast %2 : vector<1x128xf32> to vector<8x128xf32>
    %14 = arith.addf %12, %13 : vector<8x128xf32>
    %c0_10 = arith.constant 0 : index
    %c0_11 = arith.constant 0 : index
    %15 = vector.load %arg4[%c0_10, %c0_11] : memref<16x128xf32, #tpu.memory_space<vmem>>, vector<16x128xf32>
    %cst_12 = arith.constant dense<0.000000e+00> : vector<8x16xf32>
    %16 = tpu.matmul %14, %15, %cst_12 {dimension_numbers = #tpu.dot_dimension_numbers<[1], [1], [0], [0], [0, 0, 1, 0], [], []>} : vector<8x128xf32>, vector<16x128xf32>, vector<8x16xf32> -> vector<8x16xf32>
    %cst_13 = arith.constant dense<0xFF800000> : vector<8xf32>
    %17 = vector.multi_reduction <maximumf>, %16, %cst_13 [1] : vector<8x16xf32> to vector<8xf32>
    %18 = vector.shape_cast %17 : vector<8xf32> to vector<8x1xf32>
    %19 = vector.broadcast %18 : vector<8x1xf32> to vector<8x16xf32>
    %20 = arith.subf %16, %19 : vector<8x16xf32>
    %21 = math.exp %20 : vector<8x16xf32>
    %c0_14 = arith.constant 0 : index
    %c0_15 = arith.constant 0 : index
    %22 = vector.load %arg6[%c0_14, %c0_15] : memref<16x16xf32, #tpu.memory_space<vmem>>, vector<16x16xf32>
    %cst_16 = arith.constant dense<0.000000e+00> : vector<8x16xf32>
    %23 = tpu.matmul %21, %22, %cst_16 {dimension_numbers = #tpu.dot_dimension_numbers<[1], [0], [0], [1], [0, 0, 1, 1], [], []>} : vector<8x16xf32>, vector<16x16xf32>, vector<8x16xf32> -> vector<8x16xf32>
    %cst_17 = arith.constant 1.000000e-30 : f32
    %24 = vector.broadcast %cst_17 : f32 to vector<8x16xf32>
    %25 = arith.maximumf %23, %24 : vector<8x16xf32>
    %26 = tpu.reciprocal %25 {approx = true} : vector<8x16xf32> -> vector<8x16xf32>
    %27 = arith.mulf %25, %26 : vector<8x16xf32>
    %cst_18 = arith.constant 2.000000e+00 : f32
    %28 = vector.broadcast %cst_18 : f32 to vector<8x16xf32>
    %29 = arith.subf %28, %27 : vector<8x16xf32>
    %30 = arith.mulf %26, %29 : vector<8x16xf32>
    %31 = arith.mulf %21, %30 : vector<8x16xf32>
    %c0_19 = arith.constant 0 : index
    %c0_20 = arith.constant 0 : index
    %32 = vector.load %arg5[%c0_19, %c0_20] : memref<16x128xf32, #tpu.memory_space<vmem>>, vector<16x128xf32>
    %cst_21 = arith.constant dense<0.000000e+00> : vector<8x128xf32>
    %33 = tpu.matmul %31, %32, %cst_21 {dimension_numbers = #tpu.dot_dimension_numbers<[1], [0], [0], [1], [0, 0, 1, 1], [], []>} : vector<8x16xf32>, vector<16x128xf32>, vector<8x128xf32> -> vector<8x128xf32>
    %c0_22 = arith.constant 0 : index
    %c0_23 = arith.constant 0 : index
    %34 = vector.load %arg7[%c0_22, %c0_23] : memref<128x128xf32, #tpu.memory_space<vmem>>, vector<128x128xf32>
    %cst_24 = arith.constant dense<0.000000e+00> : vector<8x128xf32>
    %35 = tpu.matmul %33, %34, %cst_24 {dimension_numbers = #tpu.dot_dimension_numbers<[1], [0], [0], [1], [0, 0, 1, 1], [], []>} : vector<8x128xf32>, vector<128x128xf32>, vector<8x128xf32> -> vector<8x128xf32>
    %36 = vector.broadcast %3 : vector<1x128xf32> to vector<8x128xf32>
    %37 = arith.addf %35, %36 : vector<8x128xf32>
    %38 = arith.addf %37, %10 : vector<8x128xf32>
    %c0_25 = arith.constant 0 : index
    %c0_26 = arith.constant 0 : index
    %39 = vector.load %arg8[%c0_25, %c0_26] : memref<128x64xf32, #tpu.memory_space<vmem>>, vector<128x64xf32>
    %cst_27 = arith.constant dense<0.000000e+00> : vector<8x64xf32>
    %40 = tpu.matmul %38, %39, %cst_27 {dimension_numbers = #tpu.dot_dimension_numbers<[1], [0], [0], [1], [0, 0, 1, 1], [], []>} : vector<8x128xf32>, vector<128x64xf32>, vector<8x64xf32> -> vector<8x64xf32>
    %41 = vector.broadcast %5 : vector<1x64xf32> to vector<8x64xf32>
    %42 = arith.addf %40, %41 : vector<8x64xf32>
    %cst_28 = arith.constant 0.000000e+00 : f32
    %43 = vector.broadcast %cst_28 : f32 to vector<8x64xf32>
    %44 = arith.maximumf %42, %43 : vector<8x64xf32>
    %c0_29 = arith.constant 0 : index
    %c0_30 = arith.constant 0 : index
    %45 = vector.load %arg9[%c0_29, %c0_30] : memref<64x128xf32, #tpu.memory_space<vmem>>, vector<64x128xf32>
    %cst_31 = arith.constant dense<0.000000e+00> : vector<8x128xf32>
    %46 = tpu.matmul %44, %45, %cst_31 {dimension_numbers = #tpu.dot_dimension_numbers<[1], [0], [0], [1], [0, 0, 1, 1], [], []>} : vector<8x64xf32>, vector<64x128xf32>, vector<8x128xf32> -> vector<8x128xf32>
    %47 = vector.broadcast %4 : vector<1x128xf32> to vector<8x128xf32>
    %48 = arith.addf %46, %47 : vector<8x128xf32>
    %49 = arith.addf %48, %38 : vector<8x128xf32>
    %c0_32 = arith.constant 0 : index
    %c0_33 = arith.constant 0 : index
    %50 = vector.load %arg12[%c0_32, %c0_33] : memref<8x128xf32, #tpu.memory_space<vmem>>, vector<8x128xf32>
    tpu.vector_store %arg12[%c0_32, %c0_33], %49 {strides = array<i32>} : memref<8x128xf32, #tpu.memory_space<vmem>>, vector<8x128xf32>,
    return
  }
  func.func @transform_0(%arg0: i32) -> (i32, i32) {
    %c0_i32 = arith.constant 0 : i32
    %c0_i32_0 = arith.constant 0 : i32
    return %arg0, %c0_i32 : i32, i32
  }
  func.func @transform_1(%arg0: i32) -> (i32, i32) {
    %c0_i32 = arith.constant 0 : i32
    %c0_i32_0 = arith.constant 0 : i32
    %c0_i32_1 = arith.constant 0 : i32
    return %c0_i32, %c0_i32_0 : i32, i32
  }
  func.func @transform_2(%arg0: i32) -> (i32, i32) {
    %c0_i32 = arith.constant 0 : i32
    %c0_i32_0 = arith.constant 0 : i32
    %c0_i32_1 = arith.constant 0 : i32
    return %c0_i32, %c0_i32_0 : i32, i32
  }
  func.func @transform_3(%arg0: i32) -> (i32, i32) {
    %c0_i32 = arith.constant 0 : i32
    %c0_i32_0 = arith.constant 0 : i32
    %c0_i32_1 = arith.constant 0 : i32
    return %c0_i32, %c0_i32_0 : i32, i32
  }
  func.func @transform_4(%arg0: i32) -> (i32, i32) {
    %c0_i32 = arith.constant 0 : i32
    %c0_i32_0 = arith.constant 0 : i32
    %c0_i32_1 = arith.constant 0 : i32
    return %c0_i32, %c0_i32_0 : i32, i32
  }
  func.func @transform_5(%arg0: i32) -> (i32, i32) {
    %c0_i32 = arith.constant 0 : i32
    %c0_i32_0 = arith.constant 0 : i32
    %c0_i32_1 = arith.constant 0 : i32
    return %c0_i32, %c0_i32_0 : i32, i32
  }
  func.func @transform_6(%arg0: i32) -> (i32, i32) {
    %c0_i32 = arith.constant 0 : i32
    %c0_i32_0 = arith.constant 0 : i32
    %c0_i32_1 = arith.constant 0 : i32
    return %c0_i32, %c0_i32_0 : i32, i32
  }
  func.func @transform_7(%arg0: i32) -> (i32, i32) {
    %c0_i32 = arith.constant 0 : i32
    %c0_i32_0 = arith.constant 0 : i32
    %c0_i32_1 = arith.constant 0 : i32
    return %c0_i32, %c0_i32_0 : i32, i32
  }
  func.func @transform_8(%arg0: i32) -> (i32, i32) {
    %c0_i32 = arith.constant 0 : i32
    %c0_i32_0 = arith.constant 0 : i32
    %c0_i32_1 = arith.constant 0 : i32
    return %c0_i32, %c0_i32_0 : i32, i32
  }
  func.func @transform_9(%arg0: i32) -> (i32, i32) {
    %c0_i32 = arith.constant 0 : i32
    %c0_i32_0 = arith.constant 0 : i32
    %c0_i32_1 = arith.constant 0 : i32
    return %c0_i32, %c0_i32_0 : i32, i32
  }
  func.func @transform_10(%arg0: i32) -> (i32, i32) {
    %c0_i32 = arith.constant 0 : i32
    %c0_i32_0 = arith.constant 0 : i32
    %c0_i32_1 = arith.constant 0 : i32
    return %c0_i32, %c0_i32_0 : i32, i32
  }
  func.func @transform_11(%arg0: i32) -> (i32, i32) {
    %c0_i32 = arith.constant 0 : i32
    %c0_i32_0 = arith.constant 0 : i32
    return %arg0, %c0_i32 : i32, i32
  }
}

</mosaic_0001>

<bundles_post_ra>
// kernel: tpu_custom_call.1
= control target key start
LH: loop header
LB: loop body
LE: loop exit
PB: predicated region body
PF: predicated region fallthrough
CT: control target
= control target key end

     0   :  { %s2470_s0 = inlined_call_operand.hbm [shape: f32[16,128], index: 0, kind: input, shape index: {}]   ;;  %s2471_s1 = inlined_call_operand.vmem [shape: f32[128,128], index: 1, kind: input, shape index: {}]   ;;  %s2472_s2 = inlined_call_operand.hbm [shape: f32[128,128], index: 2, kind: input, shape index: {}]   ;;  %s2473_s3 = inlined_call_operand.hbm [shape: f32[16,128], index: 3, kind: input, shape index: {}]   ;;  %s2474_s4 = inlined_call_operand.hbm [shape: f32[16,128], index: 4, kind: input, shape index: {}]   ;;  %s2475_s5 = inlined_call_operand.hbm [shape: f32[16,16], index: 5, kind: input, shape index: {}]   ;;  %s2476_s6 = inlined_call_operand.hbm [shape: f32[128,128], index: 6, kind: input, shape index: {}]   ;;  %s2477_s7 = inlined_call_operand.vmem [shape: f32[128,64], index: 7, kind: input, shape index: {}]   ;;  %s2478_s8 = inlined_call_operand.vmem [shape: f32[64,128], index: 8, kind: input, shape index: {}]   ;;  %s2479_s9 = inlined_call_operand.vmem [shape: f32[4,128], index: 9, kind: input, shape index: {}]   ;;  %s2480_s10 = inlined_call_operand.vmem [shape: f32[1,64], index: 10, kind: input, shape index: {}]   ;;  %s2481_s11 = inlined_call_operand.hbm [shape: f32[16,128], index: 11, kind: output, shape index: {}]  }
   0x1   :  { %2486 = sst [smem:[#allocation20_spill]] %s2472_s2 }
   0x2   :  { %2487 = sst [smem:[#allocation21_spill]] %s2473_s3 }
   0x3   :  { %2488 = sst [smem:[#allocation22_spill]] %s2474_s4 }
   0x4   :  { %2489 = sst [smem:[#allocation23_spill]] %s2475_s5 }
   0x5   :  { %2490 = sst [smem:[#allocation24_spill]] %s2476_s6 }
   0x6   :  { %16 = vsyncpa [#allocation3], 0 }
   0x7   :  { %18 = vsyncpa [#allocation3 + $0x1], 0 }
   0x8   :  { %19 = vsyncpa [#allocation6], 0 }
   0x9   :  { %20 = vsyncpa [#allocation9], 0 }
   0xa   :  { %21 = vsyncpa [#allocation12], 0 }
   0xb   :  { %22 = vsyncpa [#allocation4], 0 }
   0xc   :  { %24 = vsyncpa [#allocation4 + $0x1], 0  ;;  %s2001_s17 = smov 0   ;;  %s2003_s18 = smov 0  }
   0xd   :  { %s2005_s19 = smov 0   ;;  %s2007_s20 = smov 0  }
   0xe LB: > { %s1930_s21 = smov [#allocation5]   ;;  %s2022_s23 = sadd.s32 4294967295, %s1928_s20   ;;  %s1928_s20 = sphi %s2007_s20, %s2519_s20   ;;  %s1924_s19 = sphi %s2005_s19, %s2518_s19   ;;  %s1920_s18 = sphi %s2003_s18, %s2517_s18   ;;  %s1916_s17 = sphi %s2001_s17, %s2516_s17  }
   0xf   : > { %s312_s22 = sshll.u32 %s1930_s21, 4  ;;  %p1298_p0 = scmp.ge.s32.totalorder %s1928_s20, 1  ;;  %s313_s22 = int_to_ptr.vmem [resolvable:$true] %s312_s22 }
  0x10   : > { %p2482_p1 = scmp.eq.s32.totalorder %s2022_s23, 0  ;;  %p297_p2 = scmp.lt.s32.totalorder %s1928_s20, 3 }
  0x11   : > { %s1931_s25 = smov [#allocation8]   ;;  %s1932_s28 = smov [#allocation7]  }
  0x12   : > { %p2027_p3 = pnand %p1298_p0, %p297_p2  ;;  %s338_s26 = sshll.u32 %s1931_s25, 4  ;;  %s2040_s26 = int_to_ptr.vmem [resolvable:$true] %s338_s26 }
  0x13   : > { %s325_s29 = sshll.u32 %s1932_s28, 4  ;;  %s1705_s12 = scalar_lea.vmem %s313_s22, 2048  ;;  %s2042_s29 = int_to_ptr.vmem [resolvable:$true] %s325_s29 }
  0x14   : > { %s2491_s24 = scalar_select %p2027_p3, 1, 0 }
  0x15   : > { %p1613_p5 = pneg %p2027_p3  ;;  %p1706_p8 = scmp.ne.s32.totalorder %s313_s22, %s1705_s12 }
  0x16   : > { %p1713_p11 = scmp.lt.s32.totalorder %s313_s22, %s313_s22  ;;  %p1714_p12 = scmp.lt.s32.totalorder %s1705_s12, %s1705_s12 }
  0x17   : > { %p2036_p6 = pnand %p1613_p5, %p2482_p1 }
  0x18   : > { %p1715_p13 = por %p1714_p12, %p1713_p11 }
  0x19   : > { %p2046_p7 = pneg %p2036_p6 }
  0x1b   : > { %p1708_p9 = pnand %p1706_p8, %p2046_p7 }
  0x1d   : > { %p1709_p10 = pneg %p1708_p9 }
  0x1f   : > { %p1716_p0 = pnand %p1715_p13, %p1709_p10 }
  0x21   : > { %1719 = shalt.err (!%p1716_p0)
}
  0x22   : > { %s1933_s13 = smov 128   ;;  %s1934_s14 = smov 8  }
  0x23   : > { %s2494_s2 = sld [smem:[#allocation20_spill]]  ;;  %s1731_s21 = scalar_lea.vmem %s2040_s26, 256 }
  0x24   : > { %p1732_p2 = scmp.ne.s32.totalorder %s2040_s26, %s1731_s21  ;;  %p1739_p9 = scmp.lt.s32.totalorder %s2040_s26, %s2040_s26 }
  0x25   : > { %p1740_p10 = scmp.lt.s32.totalorder %s1731_s21, %s1731_s21 }
  0x26   : > { %p1734_p5 = pnand %p1732_p2, %p2046_p7 }
  0x27   : > { %p1741_p11 = por %p1740_p10, %p1739_p9 }
  0x28   : > { %p1735_p8 = pneg %p1734_p5 }
  0x29   : > { %1616 = dma.hbm_to_vmem [thread:$0]  (!%p2036_p6), %s2494_s2, 2048, %s313_s22, [#allocation6], %s1933_s13, %s1933_s13, %s1934_s14  }
  0x2a   : > { %p1742_p12 = pnand %p1741_p11, %p1735_p8 }
  0x2c   : > { %1745 = shalt.err (!%p1742_p12)
}
  0x2d   : > { %s2495_s4 = sld [smem:[#allocation22_spill]]  ;;  %s1757_s22 = scalar_lea.vmem %s2042_s29, 256 }
  0x2e   : > { %p1758_p13 = scmp.ne.s32.totalorder %s2042_s29, %s1757_s22  ;;  %p1765_p5 = scmp.lt.s32.totalorder %s2042_s29, %s2042_s29 }
  0x2f   : > { %p1766_p8 = scmp.lt.s32.totalorder %s1757_s22, %s1757_s22 }
  0x30   : > { %p1760_p0 = pnand %p1758_p13, %p2046_p7 }
  0x31   : > { %p1767_p9 = por %p1766_p8, %p1765_p5 }
  0x32   : > { %p1761_p2 = pneg %p1760_p0 }
  0x33   : > { %1622 = dma.hbm_to_vmem [thread:$0]  (!%p2036_p6), %s2495_s4, 256, %s2040_s26, [#allocation9], %s1933_s13, %s1933_s13, %s1934_s14  }
  0x34   : > { %p1768_p10 = pnand %p1767_p9, %p1761_p2 }
  0x36   : > { %1771 = shalt.err (!%p1768_p10)
}
  0x37   : > { %s2496_s3 = sld [smem:[#allocation21_spill]]  ;;  %s1935_s26 = smov [#allocation10]  }
  0x38   : > { %s351_s16 = sshll.u32 %s1935_s26, 4  ;;  %s1936_s21 = smov [#allocation11]   ;;  %s352_s16 = int_to_ptr.vmem [resolvable:$true] %s351_s16 }
  0x39   : > { %s364_s25 = sshll.u32 %s1936_s21, 4  ;;  %s1783_s28 = scalar_lea.vmem %s352_s16, 256  ;;  %s365_s25 = int_to_ptr.vmem [resolvable:$true] %s364_s25 }
  0x3a   : > { %p1784_p11 = scmp.ne.s32.totalorder %s352_s16, %s1783_s28  ;;  %p1791_p0 = scmp.lt.s32.totalorder %s352_s16, %s352_s16 }
  0x3b   : > { %p1792_p2 = scmp.lt.s32.totalorder %s1783_s28, %s1783_s28 }
  0x3c   : > { %p1786_p12 = pnand %p1784_p11, %p2046_p7 }
  0x3d   : > { %1619 = dma.hbm_to_vmem [thread:$0]  (!%p2036_p6), %s2496_s3, 256, %s2042_s29, [#allocation6], %s1933_s13, %s1933_s13, %s1934_s14  }
  0x3e   : > { %p1787_p13 = pneg %p1786_p12  ;;  %p1793_p5 = por %p1792_p2, %p1791_p0 }
  0x40   : > { %p1794_p8 = pnand %p1793_p5, %p1787_p13 }
  0x42   : > { %1797 = shalt.err (!%p1794_p8)
}
  0x43   : > { %s2497_s5 = sld [smem:[#allocation23_spill]]  ;;  %s1809_s12 = scalar_lea.vmem %s365_s25, 2048 }
  0x44   : > { %p1810_p9 = scmp.ne.s32.totalorder %s365_s25, %s1809_s12  ;;  %p1817_p12 = scmp.lt.s32.totalorder %s365_s25, %s365_s25 }
  0x45   : > { %p1818_p0 = scmp.lt.s32.totalorder %s1809_s12, %s1809_s12 }
  0x46   : > { %p1812_p10 = pnand %p1810_p9, %p2046_p7 }
  0x47   : > { %p1819_p13 = por %p1818_p0, %p1817_p12 }
  0x48   : > { %p1813_p11 = pneg %p1812_p10 }
  0x49   : > { %1625 = dma.hbm_to_vmem [thread:$0]  (!%p2036_p6), %s2497_s5, 256, %s352_s16, [#allocation9], %s1933_s13, %s1933_s13, %s1934_s14  }
  0x4a   : > { %p1820_p2 = pnand %p1819_p13, %p1813_p11 }
  0x4c   : > { %1823 = shalt.err (!%p1820_p2)
}
  0x4d   : > { %s2498_s6 = sld [smem:[#allocation24_spill]]  ;;  %s1297_s27 = sadd.s32 4294967294, %s1928_s20  }
  0x4e   : > { %s2112_s30 = sadd.s32 1, %s1928_s20   ;;  %s37_s16 = sadd.s32 1, %s1924_s19 }
  0x4f   : > { %s34_s21 = ssub.s32 %s1928_s20, %s2112_s30  ;;  %p44_p7 = scmp.ne.s32.totalorder %s1924_s19, %s1920_s18 }
  0x50   : > { %p35_p5 = scmp.eq.s32.totalorder %s34_s21, 0  ;;  %p45_p8 = scmp.eq.s32.totalorder %s1928_s20, 0 }
  0x51   : > { %p50_p9 = scmp.ne.s32.totalorder %s1920_s18, %s1916_s17  ;;  %p284_p10 = scmp.eq.s32.totalorder %s2022_s23, 1 }
  0x52   : > { %s2124_s28 = scalar_select %p35_p5, %s1924_s19, %s37_s16  }
  0x53   : > { %1628 = dma.hbm_to_vmem [thread:$0]  (!%p2036_p6), %s2498_s6, 2048, %s365_s25, [#allocation12], %s1933_s13, %s1933_s13, %s1934_s14  }
  0x54   : > { %2499 = sst [smem:[#allocation19_spill]] %s2124_s28  ;;  %p46_p11 = por %p45_p8, %p44_p7 }
  0x55   : > { %p2128_p12 = por %p2482_p1, %p50_p9  ;;  %p2132_p6 = por %p284_p10, %p44_p7 }
  0x56   : > { %p290_p0 = scmp.eq.s32.totalorder %s1297_s27, 1  ;;  %p1642_p13 = scmp.lt.s32.totalorder %s1928_s20, 2 }
  0x57   : > { %s2500_s29 = scalar_select %p2128_p12, 1, 0 }
  0x58   : > { %s2501_s13 = scalar_select %p2132_p6, 1, 0 }
  0x59   : > { %s390_s14 = sand.u32 1, %s1924_s19   ;;  %p2138_p2 = por %p290_p0, %p50_p9 }
  0x5a   : > { %s1305_s22 = sshll.u32 %s390_s14, 3  ;;  %s1306_s12 = sshll.u32 %s1928_s20, 7 }
  0x5b   : > { %s2502_s25 = scalar_select %p2138_p2, 1, 0 }
  0x5c   : > { %s2146_s16 = scalar_lea.hbm %s2470_s0, %s1306_s12  ;;  %s394_s21 = scalar_lea.vmem [#allocation2], %s1305_s22 }
  0x5d   : > { %s401_s2 = sshll.u32 %s394_s21, 4  ;;  %p2148_p7 = pnand %p1642_p13, %p46_p11  ;;  %s402_s2 = int_to_ptr.vmem [resolvable:$true] %s401_s2 }
  0x5e   : > { %s391_s3 = scalar_lea.sflag [#allocation3], %s390_s14  ;;  %s1824_s4 = scalar_lea.hbm %s2146_s16, 128 }
  0x5f   : > { %p1825_p5 = scmp.ne.s32.totalorder %s2146_s16, %s1824_s4  ;;  %p1826_p8 = pneg %p2148_p7 }
  0x60   : > { %s1829_s26 = scalar_lea.hbm %s2470_s0, 256  ;;  %p1830_p11 = scmp.lt.s32.totalorder %s2146_s16, %s2470_s0 }
  0x61   : > { %p1827_p9 = pnand %p1826_p8, %p1825_p5  ;;  %p1831_p0 = scmp.lt.s32.totalorder %s1829_s26, %s1824_s4 }
  0x63   : > { %p1828_p10 = pneg %p1827_p9  ;;  %p1832_p13 = por %p1831_p0, %p1830_p11 }
  0x65   : > { %p1833_p4 = pnand %p1832_p13, %p1828_p10 }
  0x67   : > { %1836 = shalt.err (!%p1833_p4)
}
  0x68   : > { %s1837_s21 = scalar_lea.vmem %s402_s2, 128  ;;  %s1937_s14 = smov [#allocation2]  }
  0x69   : > { %p1838_p1 = scmp.ne.s32.totalorder %s402_s2, %s1837_s21  ;;  %s1842_s6 = sshll.u32 %s1937_s14, 4  ;;  %s1843_s6 = int_to_ptr.vmem [resolvable:$false] %s1842_s6 }
  0x6a   : > { %s1844_s28 = scalar_lea.vmem %s1843_s6, 256  ;;  %p1845_p5 = scmp.lt.s32.totalorder %s402_s2, %s1843_s6 }
  0x6b   : > { %p1840_p2 = pnand %p1838_p1, %p1826_p8  ;;  %p1846_p9 = scmp.lt.s32.totalorder %s1844_s28, %s1837_s21 }
  0x6d   : > { %p1841_p6 = pneg %p1840_p2  ;;  %p1847_p12 = por %p1846_p9, %p1845_p5 }
  0x6f   : > { %p1848_p3 = pnand %p1847_p12, %p1841_p6 }
  0x71   : > { %1851 = shalt.err (!%p1848_p3)
}
  0x72   : > { %1632 = dma.hbm_to_vmem [thread:$0]  (!%p2148_p7), %s2146_s16, 128, %s402_s2, %s391_s3  }
  0x73   : > { %p2504_p10 = scmp.ne.s32.totalorder %s2491_s24, 0 }
  0x74   : > { %s2169_s4 = sand.u32 (!%p2504_p10), 1, %s1920_s18   ;;  %p2505_p1 = scmp.ne.s32.totalorder (!%p2504_p10), %s2500_s29, 0 }
  0x75   : > { %410 = sbr.rel (%p2504_p10) target bundleno = 1920 (0x780), region = 64  ;;  %s1308_s5 = sshll.u32 (!%p2504_p10), %s2169_s4, 3 }
  0x76   : > { %s413_s6 = scalar_lea.sflag (!%p2504_p10), [#allocation3], %s2169_s4  ;;  %s2175_s28 = scalar_lea.vmem (!%p2504_p10), [#allocation2], %s1308_s5 }
  0x7a   : > { %1895 = dma.done.wait (%p2505_p1), %s413_s6, 128  }
  0x7b   : > { %1897 = vsyncadd (%p2505_p1), %s413_s6, 4294967168  ;;  %p2506_p3 = scmp.eq.s32.totalorder %s2022_s23, 0 }
  0x7d   : > { %1899 = dma.done.wait (%p2506_p3), [#allocation6], 2304   ;;  %p2507_p4 = pmov %p2506_p3 }
  0x7e   : > { %p2508_p12 = pmov %p2506_p3 }
  0x7f   : > { %1901 = vsyncadd (%p2507_p4), [#allocation6], 4294964992 }
  0x80   : > { %1903 = dma.done.wait (%p2508_p12), [#allocation9], 512   ;;  %p2509_p6 = pmov %p2506_p3 }
  0x81   : > { %p2510_p2 = pmov %p2506_p3 }
  0x82   : > { %1905 = vsyncadd (%p2509_p6), [#allocation9], 4294966784 }
  0x83   : > { %1907 = dma.done.wait (%p2510_p2), [#allocation12], 2048   ;;  %p2511_p7 = pmov %p2510_p2 }
  0x84   : > { %v1938_v0 = vmov 0.0   ;;  %vm1939_vm0 = vmmov 0   ;;  %v493_v1 = vld [vmem:[%s2471_s1 + $0x78] sm:$0xff]  ;;  %v492_v2 = vld [vmem:[%s2471_s1 + $0x70] sm:$0xff]  ;;  %v491_v3 = vld [vmem:[%s2471_s1 + $0x68] sm:$0xff]  ;;  %v494_v34 = vlaneseq  ;;  %vm730_vm1 = vcmask 130048  }
  0x85   : > { %1909 = vsyncadd (%p2511_p7), [#allocation12], 4294965248  ;;  %1409 = vmatprep.subr.mxu0 %v1938_v0  ;;  %1441 = vmatprep.mubr.msk.f32.mxu0 %vm1939_vm0, %v1938_v0  ;;  %v490_v4 = vld [vmem:[%s2471_s1 + $0x60] sm:$0xff]  ;;  %v583_v5 = vld [vmem:[#allocation5 + $0x78] sm:$0xff]  ;;  %vm1089_vm2 = vcmask 523264   ;;  %s1320_s24 = sshll.u32 %s2022_s23, 7 }
  0x86   : > { %1444 = vmatprep.subr.mxu1 %v1938_v0  ;;  %1476 = vmatprep.mubr.msk.f32.mxu1 %vm1939_vm0, %v1938_v0  ;;  %v489_v6 = vld [vmem:[%s2471_s1 + $0x58] sm:$0xff]  ;;  %v582_v7 = vld [vmem:[#allocation5 + $0x70] sm:$0xff]  ;;  %v488_v9 = vld [vmem:[%s2471_s1 + $0x50] sm:$0xff]  ;;  %v2282_v35 = vshrl.u32 %v494_v34, 7  ;;  %s474_s29 = scalar_lea.vmem [#allocation13], %s1308_s5  ;;  %s1177_s12 = scalar_lea.hbm %s2481_s11, %s1320_s24 }
  0x87   : > { %1410 = vmatpush3.msra.mxu0 %v493_v1  ;;  %1445 = vmatpush3.msra.mxu1 %v583_v5  ;;  %v581_v8 = vld [vmem:[#allocation5 + $0x68] sm:$0xff]  ;;  %v580_v10 = vld [vmem:[#allocation5 + $0x60] sm:$0xff]  ;;  %v487_v11 = vld [vmem:[%s2471_s1 + $0x48] sm:$0xff]  ;;  %s1179_s16 = sshll.u32 %s474_s29, 4  ;;  %s1166_s15 = scalar_lea.sflag [#allocation4], %s2169_s4  ;;  %s1180_s16 = int_to_ptr.vmem [resolvable:$true] %s1179_s16 }
  0x88   : > { %1411 = vmatprep.subr.mxu0 %v1938_v0  ;;  %1446 = vmatprep.subr.mxu1 %v1938_v0  ;;  %v579_v12 = vld [vmem:[#allocation5 + $0x58] sm:$0xff]  ;;  %v486_v13 = vld [vmem:[%s2471_s1 + $0x40] sm:$0xff]  ;;  %v485_v15 = vld [vmem:[%s2471_s1 + $0x38] sm:$0xff]  ;;  %v496_v36 = vsub.s32 0, %v2282_v35  ;;  %v586_v44 = vsub.s32 1, %v2282_v35  ;;  %s1852_s26 = scalar_lea.vmem %s1180_s16, 128 }
  0x89   : > { %1412 = vmatpush3.msra.mxu0 %v492_v2  ;;  %1447 = vmatpush3.msra.mxu1 %v582_v7  ;;  %v578_v14 = vld [vmem:[#allocation5 + $0x50] sm:$0xff]  ;;  %v577_v16 = vld [vmem:[#allocation5 + $0x48] sm:$0xff]  ;;  %v484_v17 = vld [vmem:[%s2471_s1 + $0x30] sm:$0xff]  ;;  %p1853_p8 = scmp.ne.s32.totalorder %s1180_s16, %s1852_s26  ;;  %p2512_p11 = scmp.ne.s32.totalorder %s2501_s13, 0 }
  0x8a   : > { %1413 = vmatprep.subr.mxu0 %v1938_v0  ;;  %1448 = vmatprep.subr.mxu1 %v1938_v0  ;;  %v576_v18 = vld [vmem:[#allocation5 + $0x40] sm:$0xff]  ;;  %v483_v19 = vld [vmem:[%s2471_s1 + $0x28] sm:$0xff]  ;;  %v482_v21 = vld [vmem:[%s2471_s1 + $0x20] sm:$0xff]  ;;  %s1940_s22 = smov [#allocation13]  }
  0x8b   : > { %1414 = vmatpush3.msra.mxu0 %v491_v3  ;;  %1449 = vmatpush3.msra.mxu1 %v581_v8  ;;  %v575_v20 = vld [vmem:[#allocation5 + $0x38] sm:$0xff]  ;;  %v574_v22 = vld [vmem:[#allocation5 + $0x30] sm:$0xff]  ;;  %v481_v23 = vld [vmem:[%s2471_s1 + $0x18] sm:$0xff]  ;;  %p1854_p0 = pnand %p1853_p8, %p2512_p11  ;;  %s1856_s23 = sshll.u32 %s1940_s22, 4  ;;  %s1857_s23 = int_to_ptr.vmem [resolvable:$false] %s1856_s23 }
  0x8c   : > { %1415 = vmatprep.subr.mxu0 %v1938_v0  ;;  %1450 = vmatprep.subr.mxu1 %v1938_v0  ;;  %v573_v24 = vld [vmem:[#allocation5 + $0x28] sm:$0xff]  ;;  %v480_v25 = vld [vmem:[%s2471_s1 + $0x10] sm:$0xff]  ;;  %v479_v27 = vld [vmem:[%s2471_s1 + $0x8] sm:$0xff]  ;;  %s1858_s5 = scalar_lea.vmem %s1857_s23, 256  ;;  %p1859_p5 = scmp.lt.s32.totalorder %s1180_s16, %s1857_s23 }
  0x8d   : > { %1416 = vmatpush3.msra.mxu0 %v490_v4  ;;  %1451 = vmatpush3.msra.mxu1 %v580_v10  ;;  %v572_v26 = vld [vmem:[#allocation5 + $0x20] sm:$0xff]  ;;  %v571_v28 = vld [vmem:[#allocation5 + $0x18] sm:$0xff]  ;;  %v478_v29 = vld [vmem:[%s2471_s1] sm:$0xff]  ;;  %p1855_p13 = pneg %p1854_p0  ;;  %p1860_p9 = scmp.lt.s32.totalorder %s1858_s5, %s1852_s26 }
  0x8e   : > { %1417 = vmatprep.subr.mxu0 %v1938_v0  ;;  %1452 = vmatprep.subr.mxu1 %v1938_v0  ;;  %v477_v30 = vld [vmem:[%s2175_s28] sm:$0xff]  ;;  %v569_v32 = vld [vmem:[#allocation5 + $0x8] sm:$0xff]  ;;  %v568_v33 = vld [vmem:[#allocation5] sm:$0xff] }
  0x8f   : > { %1418 = vmatpush3.msra.mxu0 %v489_v6  ;;  %1453 = vmatpush3.msra.mxu1 %v579_v12  ;;  %v570_v31 = vld [vmem:[#allocation5 + $0x10] sm:$0xff]  ;;  %v659_v41 = vld [vmem:[#allocation7 + $0x8] sm:$0xff]  ;;  %v658_v43 = vld [vmem:[#allocation7] sm:$0xff]  ;;  %p1861_p10 = por %p1860_p9, %p1859_p5 }
  0x90   : > { %1419 = vmatprep.subr.mxu0 %v1938_v0  ;;  %1454 = vmatprep.subr.mxu1 %v1938_v0  ;;  %v2288_v37 = vld [vmem:[%s2479_s9] sm:$0xf]  ;;  %v738_v52 = vld [vmem:[#allocation10 + $0x8] sm:$0xff]  ;;  %v737_v53 = vld [vmem:[#allocation10] sm:$0xff] }
  0x91   : > { %1420 = vmatpush3.msra.mxu0 %v488_v9  ;;  %1455 = vmatpush3.msra.mxu1 %v578_v14  ;;  %v497_v38 = vrot.slane %v2288_v37, %v496_v36  ;;  %v587_v45 = vrot.slane %v2288_v37, %v586_v44  ;;  %v819_v58 = vld [vmem:[#allocation8 + $0x8] sm:$0xff]  ;;  %v818_v59 = vld [vmem:[#allocation8] sm:$0xff]  ;;  %v908_v60 = vld [vmem:[#allocation11 + $0x78] sm:$0xff]  ;;  %p1862_p1 = pnand %p1861_p10, %p1855_p13 }
  0x92   : > { %1421 = vmatprep.subr.mxu0 %v1938_v0  ;;  %1456 = vmatprep.subr.mxu1 %v1938_v0  ;;  %v907_v61 = vld [vmem:[#allocation11 + $0x70] sm:$0xff]  ;;  %v906_v62 = vld [vmem:[#allocation11 + $0x68] sm:$0xff]  ;;  %v905_v63 = vld [vmem:[#allocation11 + $0x60] sm:$0xff] }
  0x93   : > { %1422 = vmatpush3.msra.mxu0 %v487_v11  ;;  %1457 = vmatpush3.msra.mxu1 %v577_v16  ;;  %v904_v1 = vld [vmem:[#allocation11 + $0x58] sm:$0xff]  ;;  %v903_v2 = vld [vmem:[#allocation11 + $0x50] sm:$0xff]  ;;  %v902_v3 = vld [vmem:[#allocation11 + $0x48] sm:$0xff] }
  0x94   : > { %1423 = vmatprep.subr.mxu0 %v1938_v0  ;;  %1458 = vmatprep.subr.mxu1 %v1938_v0  ;;  %v901_v4 = vld [vmem:[#allocation11 + $0x40] sm:$0xff]  ;;  %v900_v5 = vld [vmem:[#allocation11 + $0x38] sm:$0xff]  ;;  %v899_v6 = vld [vmem:[#allocation11 + $0x30] sm:$0xff] }
  0x95   : > { %1424 = vmatpush3.msra.mxu0 %v486_v13  ;;  %1459 = vmatpush3.msra.mxu1 %v576_v18  ;;  %v898_v7 = vld [vmem:[#allocation11 + $0x28] sm:$0xff]  ;;  %v897_v8 = vld [vmem:[#allocation11 + $0x20] sm:$0xff]  ;;  %v896_v9 = vld [vmem:[#allocation11 + $0x18] sm:$0xff] }
  0x96   : > { %1425 = vmatprep.subr.mxu0 %v1938_v0  ;;  %1460 = vmatprep.subr.mxu1 %v1938_v0  ;;  %v895_v10 = vld [vmem:[#allocation11 + $0x10] sm:$0xff]  ;;  %v894_v11 = vld [vmem:[#allocation11 + $0x8] sm:$0xff] }
  0x97   : > { %1426 = vmatpush3.msra.mxu0 %v485_v15  ;;  %1461 = vmatpush3.msra.mxu1 %v575_v20  ;;  %v893_v20 = vld [vmem:[#allocation11] sm:$0xff]  ;;  %v1082_v44 = vld [vmem:[%s2478_s8 + $0x28] sm:$0xff] }
  0x98   : > { %1427 = vmatprep.subr.mxu0 %v1938_v0  ;;  %1462 = vmatprep.subr.mxu1 %v1938_v0 }
  0x99   : > { %1428 = vmatpush3.msra.mxu0 %v484_v17  ;;  %1463 = vmatpush3.msra.mxu1 %v574_v22  ;;  %v998_v22 = vld [vmem:[%s2477_s7 + $0x70] sm:$0xff] }
  0x9a   : > { %1429 = vmatprep.subr.mxu0 %v1938_v0  ;;  %1464 = vmatprep.subr.mxu1 %v1938_v0 }
  0x9b   : > { %1430 = vmatpush3.msra.mxu0 %v483_v19  ;;  %1465 = vmatpush3.msra.mxu1 %v573_v24  ;;  %v996_v24 = vld [vmem:[%s2477_s7 + $0x60] sm:$0xff] }
  0x9c   : > { %1431 = vmatprep.subr.mxu0 %v1938_v0  ;;  %1466 = vmatprep.subr.mxu1 %v1938_v0 }
  0x9d   : > { %1432 = vmatpush3.msra.mxu0 %v482_v21  ;;  %1467 = vmatpush3.msra.mxu1 %v572_v26  ;;  %v999_v21 = vld [vmem:[%s2477_s7 + $0x78] sm:$0xff]  ;;  %v994_v26 = vld [vmem:[%s2477_s7 + $0x50] sm:$0xff] }
  0x9e   : > { %1433 = vmatprep.subr.mxu0 %v1938_v0  ;;  %1468 = vmatprep.subr.mxu1 %v1938_v0 }
  0x9f   : > { %1434 = vmatpush3.msra.mxu0 %v481_v23  ;;  %1469 = vmatpush3.msra.mxu1 %v571_v28  ;;  %v997_v23 = vld [vmem:[%s2477_s7 + $0x68] sm:$0xff]  ;;  %v992_v28 = vld [vmem:[%s2477_s7 + $0x40] sm:$0xff] }
  0xa0   : > { %1435 = vmatprep.subr.mxu0 %v1938_v0  ;;  %1470 = vmatprep.subr.mxu1 %v1938_v0 }
  0xa1   : > { %1436 = vmatpush3.msra.mxu0 %v480_v25  ;;  %1471 = vmatpush3.msra.mxu1 %v570_v31  ;;  %v995_v25 = vld [vmem:[%s2477_s7 + $0x58] sm:$0xff]  ;;  %v989_v31 = vld [vmem:[%s2477_s7 + $0x28] sm:$0xff] }
  0xa2   : > { %1437 = vmatprep.subr.mxu0 %v1938_v0  ;;  %1472 = vmatprep.subr.mxu1 %v1938_v0 }
  0xa3   : > { %1438 = vmatpush3.msra.mxu0 %v479_v27  ;;  %1473 = vmatpush3.msra.mxu1 %v569_v32  ;;  %v993_v27 = vld [vmem:[%s2477_s7 + $0x48] sm:$0xff]  ;;  %v988_v32 = vld [vmem:[%s2477_s7 + $0x20] sm:$0xff] }
  0xa4   : > { %1439 = vmatprep.subr.mxu0 %v1938_v0  ;;  %1474 = vmatprep.subr.mxu1 %v1938_v0 }
  0xa5   : > { %1440 = vmatpush3.msra.mxu0 %v478_v29  ;;  %1475 = vmatpush3.msra.mxu1 %v568_v33  ;;  %v991_v29 = vld [vmem:[%s2477_s7 + $0x38] sm:$0xff] }
  0xa6   : > { %1442 = vmatmul.mubr.f32.vlgmr.msra.gmra.mxu0 %v477_v30  ;;  %1500 = vmatprep.subr.mxu0 %v1938_v0  ;;  %v990_v30 = vld [vmem:[%s2477_s7 + $0x30] sm:$0xff]  ;;  %v987_v33 = vld [vmem:[%s2477_s7 + $0x18] sm:$0xff] }
  0xa7   : > { %1532 = vmatprep.mubr.msk.f32.mxu0 %vm1939_vm0, %v1938_v0  ;;  %1479 = vmatprep.subr.mxu1 %v1938_v0 }
  0xa8   : > { %1501 = vmatpush3.msra.mxu0 %v908_v60  ;;  %v1087_v60 = vsub.s32 3, %v2282_v35 }
  0xa9   : > { %1502 = vmatprep.subr.mxu0 %v1938_v0 }
  0xaa   : > { %1503 = vmatpush3.msra.mxu0 %v907_v61 }
  0xab   : > { %1504 = vmatprep.subr.mxu0 %v1938_v0 }
  0xac   : > { %1505 = vmatpush3.msra.mxu0 %v906_v62 }
  0xad   : > { %1506 = vmatprep.subr.mxu0 %v1938_v0 }
  0xae   : > { %1507 = vmatpush3.msra.mxu0 %v905_v63 }
  0xaf   : > { %1508 = vmatprep.subr.mxu0 %v1938_v0 }
  0xb0   : > { %1509 = vmatpush3.msra.mxu0 %v904_v1 }
  0xb1   : > { %1510 = vmatprep.subr.mxu0 %v1938_v0 }
  0xb2   : > { %1511 = vmatpush3.msra.mxu0 %v903_v2 }
  0xb3   : > { %1512 = vmatprep.subr.mxu0 %v1938_v0 }
  0xb4   : > { %1513 = vmatpush3.msra.mxu0 %v902_v3 }
  0xb5   : > { %1514 = vmatprep.subr.mxu0 %v1938_v0 }
  0xb6   : > { %1515 = vmatpush3.msra.mxu0 %v901_v4 }
  0xb7   : > { %1516 = vmatprep.subr.mxu0 %v1938_v0 }
  0xb8   : > { %1517 = vmatpush3.msra.mxu0 %v900_v5 }
  0xb9   : > { %1518 = vmatprep.subr.mxu0 %v1938_v0 }
  0xba   : > { %1519 = vmatpush3.msra.mxu0 %v899_v6 }
  0xbb   : > { %1520 = vmatprep.subr.mxu0 %v1938_v0 }
  0xbc   : > { %1521 = vmatpush3.msra.mxu0 %v898_v7 }
  0xbd   : > { %1522 = vmatprep.subr.mxu0 %v1938_v0 }
  0xbe   : > { %1523 = vmatpush3.msra.mxu0 %v897_v8 }
  0xbf   : > { %1524 = vmatprep.subr.mxu0 %v1938_v0 }
  0xc0   : > { %1525 = vmatpush3.msra.mxu0 %v896_v9 }
  0xc1   : > { %1526 = vmatprep.subr.mxu0 %v1938_v0 }
  0xc2   : > { %1527 = vmatpush3.msra.mxu0 %v895_v10 }
  0xc3   : > { %1528 = vmatprep.subr.mxu0 %v1938_v0 }
  0xc4   : > { %1529 = vmatpush3.msra.mxu0 %v894_v11 }
  0xc5   : > { %1530 = vmatprep.subr.mxu0 %v1938_v0 }
  0xc6   : > { %1531 = vmatpush3.msra.mxu0 %v893_v20 }
  0xc7   : > { %1570 = vmatprep.subr.mxu0 %v1938_v0 }
 0x166   : > { %v564_v39 = vpop.f32.mrf.mxu0 }
 0x167   : > { %v2291_v40 = vadd.f32 %v564_v39, %v497_v38  ;;  %v986_v38 = vld [vmem:[%s2477_s7 + $0x10] sm:$0xff]  ;;  %v985_v39 = vld [vmem:[%s2477_s7 + $0x8] sm:$0xff] }
 0x168   : > { %v1443_v42 = vpop.f32.mrf.mxu0 }
 0x169   : > { %1477 = vmatmul.mubr.f32.vlgmr.msra.gmra.mxu1 %v2291_v40  ;;  %v1084_v42 = vld [vmem:[%s2478_s8 + $0x38] sm:$0xff] }
 0x16a   : > { %1480 = vmatpush3.xpose.msra.mxu1 %v659_v41  ;;  %1483 = vmatprep.mubr.msk.f32.mxu1 %vm1939_vm0, %v1938_v0  ;;  %v984_v41 = vld [vmem:[%s2477_s7] sm:$0xff] }
 0x16b   : > { %1481 = vmatprep.subr.mxu1 %v1938_v0 }
 0x16e   : > { %1482 = vmatpush3.xpose.msra.mxu1 %v658_v43  ;;  %v1083_v43 = vld [vmem:[%s2478_s8 + $0x30] sm:$0xff] }
 0x16f   : > { %1486 = vmatprep.subr.mxu1 %v1938_v0 }
 0x229   : > { %v654_v46 = vpop.f32.mrf.mxu1 }
 0x22a   : > { %v655_v47 = vadd.f32 %v654_v46, %v587_v45  ;;  %v1081_v45 = vld [vmem:[%s2478_s8 + $0x20] sm:$0xff]  ;;  %v1080_v46 = vld [vmem:[%s2478_s8 + $0x18] sm:$0xff] }
 0x22b   : > { %v1478_v48 = vpop.f32.mrf.mxu1 }
 0x22c   : > { %1484 = vmatmul.mubr.f32.vlgmr.msra.gmra.mxu1 %v655_v47  ;;  %v911_v47 = vsub.s32 2, %v2282_v35 }
 0x22d   : > { %1490 = vmatprep.mubr.msk.f32.mxu1 %vm1939_vm0, %v1938_v0  ;;  %1487 = vmatpush3.msra.mxu1 %v738_v52 }
 0x22e   : > { %1488 = vmatprep.subr.mxu1 %v1938_v0  ;;  %v912_v48 = vrot.slane %v2288_v37, %v911_v47 }
 0x22f   : > { %1489 = vmatpush3.msra.mxu1 %v737_v53  ;;  %v1079_v53 = vld [vmem:[%s2478_s8 + $0x10] sm:$0xff] }
 0x230   : > { %1493 = vmatprep.subr.mxu1 %v1938_v0 }
 0x2ec   : > { %v726_v49 = vpop.f32.mrf.mxu1 }
 0x2ed   : > { %v731_v50 = vsel %vm730_vm1, %v726_v49, -inf }
 0x2ee   : > { %v1485_v51 = vpop.f32.mrf.mxu1  ;;  %732 = vmax.xlane.f32.xlu0 %v731_v50 }
 0x377   : > { %v733_v54 = vpop.xlane.xlu0 %732 }
 0x378   : > { %v734_v55 = vsub.f32 %v726_v49, %v733_v54  ;;  %v1078_v54 = vld [vmem:[%s2478_s8 + $0x8] sm:$0xff] }
 0x37a   : > { %v735_v56 = vmul.f32 1.442695, %v734_v55  ;;  %v1317_v55 = vld [vmem:[%s2480_s10] ss:$0 sm:$0xff] }
 0x37c   : > { %1690 = vpow2.f32 %v735_v56 }
 0x389   : > { %v1691_v57 = vpop.eup %1690 }
 0x38a   : > { %1491 = vmatmul.mubr.msk.f32.vlgmr.msra.gmra.mxu1 %vm730_vm1, %v1691_v57 }
 0x38b   : > { %1497 = vmatprep.mubr.msk.f32.mxu1 %vm1939_vm0, %v1938_v0  ;;  %1494 = vmatpush3.msra.mxu1 %v819_v58 }
 0x38c   : > { %1495 = vmatprep.subr.mxu1 %v1938_v0 }
 0x38d   : > { %1496 = vmatpush3.msra.mxu1 %v818_v59 }
 0x38e   : > { %1535 = vmatprep.subr.mxu1 %v1938_v0 }
 0x44a   : > { %v808_v12 = vpop.f32.mrf.mxu1 }
 0x44b   : > { %v812_v13 = vmax.f32 %v808_v12, 1e-30 }
 0x44c   : > { %v1492_v14 = vpop.f32.mrf.mxu1 }
 0x44d   : > { %1692 = vrcp.f32 %v812_v13 }
 0x45a   : > { %v1693_v15 = vpop.eup %1692 }
 0x45b   : > { %v814_v16 = vmul.f32 %v1693_v15, %v812_v13 }
 0x45d   : > { %v815_v17 = vsub.f32 2.0, %v814_v16 }
 0x45f   : > { %v816_v18 = vmul.f32 %v1693_v15, %v815_v17 }
 0x461   : > { %v817_v19 = vmul.f32 %v1691_v57, %v816_v18 }
 0x463   : > { %1498 = vmatmul.mubr.msk.f32.vlgmr.msra.gmra.mxu1 %vm730_vm1, %v817_v19 }
 0x464   : > { %1567 = vmatprep.mubr.msk.f32.mxu1 %vm1939_vm0, %v1938_v0  ;;  %1536 = vmatpush3.msra.mxu1 %v999_v21 }
 0x465   : > { %1537 = vmatprep.subr.mxu1 %v1938_v0 }
 0x466   : > { %1538 = vmatpush3.msra.mxu1 %v998_v22 }
 0x467   : > { %1539 = vmatprep.subr.mxu1 %v1938_v0 }
 0x468   : > { %1540 = vmatpush3.msra.mxu1 %v997_v23 }
 0x469   : > { %1541 = vmatprep.subr.mxu1 %v1938_v0 }
 0x46a   : > { %1542 = vmatpush3.msra.mxu1 %v996_v24 }
 0x46b   : > { %1543 = vmatprep.subr.mxu1 %v1938_v0 }
 0x46c   : > { %1544 = vmatpush3.msra.mxu1 %v995_v25 }
 0x46d   : > { %1545 = vmatprep.subr.mxu1 %v1938_v0 }
 0x46e   : > { %1546 = vmatpush3.msra.mxu1 %v994_v26 }
 0x46f   : > { %1547 = vmatprep.subr.mxu1 %v1938_v0 }
 0x470   : > { %1548 = vmatpush3.msra.mxu1 %v993_v27 }
 0x471   : > { %1549 = vmatprep.subr.mxu1 %v1938_v0 }
 0x472   : > { %1550 = vmatpush3.msra.mxu1 %v992_v28 }
 0x473   : > { %1551 = vmatprep.subr.mxu1 %v1938_v0 }
 0x474   : > { %1552 = vmatpush3.msra.mxu1 %v991_v29 }
 0x475   : > { %1553 = vmatprep.subr.mxu1 %v1938_v0 }
 0x476   : > { %1554 = vmatpush3.msra.mxu1 %v990_v30 }
 0x477   : > { %1555 = vmatprep.subr.mxu1 %v1938_v0 }
 0x478   : > { %1556 = vmatpush3.msra.mxu1 %v989_v31 }
 0x479   : > { %1557 = vmatprep.subr.mxu1 %v1938_v0 }
 0x47a   : > { %1558 = vmatpush3.msra.mxu1 %v988_v32 }
 0x47b   : > { %1559 = vmatprep.subr.mxu1 %v1938_v0 }
 0x47c   : > { %1560 = vmatpush3.msra.mxu1 %v987_v33 }
 0x47d   : > { %1561 = vmatprep.subr.mxu1 %v1938_v0 }
 0x47e   : > { %1562 = vmatpush3.msra.mxu1 %v986_v38 }
 0x47f   : > { %1563 = vmatprep.subr.mxu1 %v1938_v0 }
 0x480   : > { %1564 = vmatpush3.msra.mxu1 %v985_v39 }
 0x481   : > { %1565 = vmatprep.subr.mxu1 %v1938_v0 }
 0x482   : > { %1566 = vmatpush3.msra.mxu1 %v984_v41 }
 0x523   : > { %v889_v34 = vpop.f32.mrf.mxu1 }
 0x524   : > { %1533 = vmatmul.mubr.f32.vlgmr.msra.gmra.mxu0 %v889_v34 }
 0x525   : > { %v1499_v36 = vpop.f32.mrf.mxu1  ;;  %1586 = vmatprep.mubr.msk.f32.mxu0 %vm1939_vm0, %v1938_v0  ;;  %1571 = vmatpush3.msra.mxu0 %v1084_v42 }
 0x526   : > { %1572 = vmatprep.subr.mxu0 %v1938_v0 }
 0x527   : > { %1573 = vmatpush3.msra.mxu0 %v1083_v43 }
 0x528   : > { %1574 = vmatprep.subr.mxu0 %v1938_v0 }
 0x529   : > { %1575 = vmatpush3.msra.mxu0 %v1082_v44 }
 0x52a   : > { %1576 = vmatprep.subr.mxu0 %v1938_v0 }
 0x52b   : > { %1577 = vmatpush3.msra.mxu0 %v1081_v45 }
 0x52c   : > { %1578 = vmatprep.subr.mxu0 %v1938_v0 }
 0x52d   : > { %1579 = vmatpush3.msra.mxu0 %v1080_v46 }
 0x52e   : > { %1580 = vmatprep.subr.mxu0 %v1938_v0 }
 0x52f   : > { %1581 = vmatpush3.msra.mxu0 %v1079_v53 }
 0x530   : > { %1582 = vmatprep.subr.mxu0 %v1938_v0 }
 0x531   : > { %1583 = vmatpush3.msra.mxu0 %v1078_v54 }
 0x532   : > { %1584 = vmatprep.subr.mxu0 %v1938_v0  ;;  %v1088_v0 = vrot.slane %v2288_v37, %v1087_v60 }
 0x5e4   : > { %v979_v49 = vpop.f32.mrf.mxu0 }
 0x5e5   : > { %v980_v50 = vadd.f32 %v979_v49, %v912_v48 }
 0x5e6   : > { %v1534_v51 = vpop.f32.mrf.mxu0 }
 0x5e7   : > { %v983_v52 = vadd.f32 %v980_v50, %v2291_v40  ;;  %v1077_v40 = vld [vmem:[%s2478_s8] sm:$0xff] }
 0x5e8   : > { %1585 = vmatpush3.msra.mxu0 %v1077_v40 }
 0x5e9   : > { %1568 = vmatmul.mubr.f32.vlgmr.msra.gmra.mxu1 %v983_v52 }
 0x6a9   : > { %v1072_v56 = vpop.f32.mrf.mxu1 }
 0x6aa   : > { %v1073_v57 = vadd.f32 %v1317_v55, %v1072_v56 }
 0x6ab   : > { %v1569_v58 = vpop.f32.mrf.mxu1 }
 0x6ac   : > { %v1076_v59 = vmax.f32 %v1073_v57, 0.0 }
 0x6ae   : > { %1587 = vmatmul.mubr.msk.f32.vlgmr.msra.gmra.mxu0 %vm1089_vm2, %v1076_v59 }
 0x76e   : > { %v1159_v61 = vpop.f32.mrf.mxu0 }
 0x76f   : > { %v1160_v62 = vadd.f32 %v1159_v61, %v1088_v0 }
 0x770   : > { %v1588_v63 = vpop.f32.mrf.mxu0 }
 0x771   : > { %v1163_v1 = vadd.f32 %v1160_v62, %v983_v52 }
 0x773   : > { %1164 = vst [vmem:[%s474_s29] sm:$0xff] %v1163_v1 }
 0x774   : > { %1865 = shalt.err (!%p1862_p1)
}
 0x775   : > { %s1866_s21 = scalar_lea.hbm %s1177_s12, 128  ;;  %s1870_s6 = scalar_lea.hbm %s2481_s11, 256 }
 0x776   : > { %p1867_p3 = scmp.ne.s32.totalorder %s1177_s12, %s1866_s21  ;;  %p1871_p6 = scmp.lt.s32.totalorder %s1177_s12, %s2481_s11 }
 0x777   : > { %p1872_p2 = scmp.lt.s32.totalorder %s1870_s6, %s1866_s21 }
 0x778   : > { %p1868_p4 = pnand %p1867_p3, %p2512_p11 }
 0x779   : > { %p1873_p7 = por %p1872_p2, %p1871_p6 }
 0x77a   : > { %p1869_p12 = pneg %p1868_p4 }
 0x77c   : > { %p1874_p8 = pnand %p1873_p7, %p1869_p12 }
 0x77e   : > { %1877 = shalt.err (!%p1874_p8)
}
 0x77f   : > { %1611 = dma.vmem_to_hbm [thread:$0]  (%p2512_p11), %s1180_s16, 128, %s1177_s12, %s1166_s15  }
 0x780 PF: > { %s1191_s24 = sand.u32 1, %s1916_s17   ;;  %p2513_p0 = scmp.ne.s32.totalorder %s2502_s25, 0 }
 0x781   : > { %p2514_p13 = scmp.ge.s32.totalorder %s1928_s20, 2  ;;  %s1192_s29 = scalar_lea.sflag [#allocation4], %s1191_s24 }
 0x783   : > { %p1634_p5 = pnand %p2514_p13, %p2513_p0 }
 0x785   : > { %p1635_p9 = pneg %p1634_p5 }
 0x787   : > { %1911 = dma.done.wait (%p1635_p9), %s1192_s29, 128  }
 0x788   : > { %1913 = vsyncadd (%p1635_p9), %s1192_s29, 4294967168  ;;  %s2515_s27 = sld [smem:[#allocation19_spill]]  ;;  %p27_p10 = scmp.ge.s32.totalorder %s2112_s30, 4  }
 0x789   : > { %s2516_s17 = smov %s1920_s18  ;;  %s2517_s18 = smov %s1924_s19 }
 0x78a   : > { %s2519_s20 = smov %s2112_s30  ;;  %29 = sbr.rel (!%p27_p10) target bundleno = 14 (0xe), region = 129 }
 0x78e   : > { %s2518_s19 = smov %s2515_s27 }
 0x78f   :  { %1197 = vsyncpa [#allocation3], 1 }
 0x790   :  { %1199 = vsyncpa [#allocation3 + $0x1], 1 }
 0x791   :  { %1200 = vsyncpa [#allocation6], 1 }
 0x792   :  { %1201 = vsyncpa [#allocation9], 1 }
 0x793   :  { %1202 = vsyncpa [#allocation12], 1 }
 0x794   :  { %1203 = vsyncpa [#allocation4], 1 }
 0x795   :  { %1205 = vsyncpa [#allocation4 + $0x1], 1 }

// kernel: tpu_custom_call.1
= control target key start
LH: loop header
LB: loop body
LE: loop exit
PB: predicated region body
PF: predicated region fallthrough
CT: control target
= control target key end

     0   :  { %s2470_s0 = inlined_call_operand.hbm [shape: f32[16,128], index: 0, kind: input, shape index: {}]   ;;  %s2471_s1 = inlined_call_operand.vmem [shape: f32[128,128], index: 1, kind: input, shape index: {}]   ;;  %s2472_s2 = inlined_call_operand.hbm [shape: f32[128,128], index: 2, kind: input, shape index: {}]   ;;  %s2473_s3 = inlined_call_operand.hbm [shape: f32[16,128], index: 3, kind: input, shape index: {}]   ;;  %s2474_s4 = inlined_call_operand.hbm [shape: f32[16,128], index: 4, kind: input, shape index: {}]   ;;  %s2475_s5 = inlined_call_operand.hbm [shape: f32[16,16], index: 5, kind: input, shape index: {}]   ;;  %s2476_s6 = inlined_call_operand.hbm [shape: f32[128,128], index: 6, kind: input, shape index: {}]   ;;  %s2477_s7 = inlined_call_operand.vmem [shape: f32[128,64], index: 7, kind: input, shape index: {}]   ;;  %s2478_s8 = inlined_call_operand.vmem [shape: f32[64,128], index: 8, kind: input, shape index: {}]   ;;  %s2479_s9 = inlined_call_operand.vmem [shape: f32[4,128], index: 9, kind: input, shape index: {}]   ;;  %s2480_s10 = inlined_call_operand.vmem [shape: f32[1,64], index: 10, kind: input, shape index: {}]   ;;  %s2481_s11 = inlined_call_operand.hbm [shape: f32[16,128], index: 11, kind: output, shape index: {}]  }
   0x1   :  { %2486 = sst [smem:[#allocation20_spill]] %s2472_s2 }
   0x2   :  { %2487 = sst [smem:[#allocation21_spill]] %s2473_s3 }
   0x3   :  { %2488 = sst [smem:[#allocation22_spill]] %s2474_s4 }
   0x4   :  { %2489 = sst [smem:[#allocation23_spill]] %s2475_s5 }
   0x5   :  { %2490 = sst [smem:[#allocation24_spill]] %s2476_s6 }
   0x6   :  { %16 = vsyncpa [#allocation3], 0 }
   0x7   :  { %18 = vsyncpa [#allocation3 + $0x1], 0 }
   0x8   :  { %19 = vsyncpa [#allocation6], 0 }
   0x9   :  { %20 = vsyncpa [#allocation9], 0 }
   0xa   :  { %21 = vsyncpa [#allocation12], 0 }
   0xb   :  { %22 = vsyncpa [#allocation4], 0 }
   0xc   :  { %24 = vsyncpa [#allocation4 + $0x1], 0  ;;  %s2001_s17 = smov 0   ;;  %s2003_s18 = smov 0  }
   0xd   :  { %s2005_s19 = smov 0   ;;  %s2007_s20 = smov 0  }
   0xe LB: > { %s1930_s21 = smov [#allocation5]   ;;  %s2022_s23 = sadd.s32 4294967295, %s1928_s20   ;;  %s1928_s20 = sphi %s2007_s20, %s2519_s20   ;;  %s1924_s19 = sphi %s2005_s19, %s2518_s19   ;;  %s1920_s18 = sphi %s2003_s18, %s2517_s18   ;;  %s1916_s17 = sphi %s2001_s17, %s2516_s17  }
   0xf   : > { %s312_s22 = sshll.u32 %s1930_s21, 4  ;;  %p1298_p0 = scmp.ge.s32.totalorder %s1928_s20, 1  ;;  %s313_s22 = int_to_ptr.vmem [resolvable:$true] %s312_s22 }
  0x10   : > { %p2482_p1 = scmp.eq.s32.totalorder %s2022_s23, 0  ;;  %p297_p2 = scmp.lt.s32.totalorder %s1928_s20, 3 }
  0x11   : > { %s1931_s25 = smov [#allocation8]   ;;  %s1932_s28 = smov [#allocation7]  }
  0x12   : > { %p2027_p3 = pnand %p1298_p0, %p297_p2  ;;  %s338_s26 = sshll.u32 %s1931_s25, 4  ;;  %s2040_s26 = int_to_ptr.vmem [resolvable:$true] %s338_s26 }
  0x13   : > { %s325_s29 = sshll.u32 %s1932_s28, 4  ;;  %s1705_s12 = scalar_lea.vmem %s313_s22, 2048  ;;  %s2042_s29 = int_to_ptr.vmem [resolvable:$true] %s325_s29 }
  0x14   : > { %s2491_s24 = scalar_select %p2027_p3, 1, 0 }
  0x15   : > { %p1613_p5 = pneg %p2027_p3  ;;  %p1706_p8 = scmp.ne.s32.totalorder %s313_s22, %s1705_s12 }
  0x16   : > { %p1713_p11 = scmp.lt.s32.totalorder %s313_s22, %s313_s22  ;;  %p1714_p12 = scmp.lt.s32.totalorder %s1705_s12, %s1705_s12 }
  0x17   : > { %p2036_p6 = pnand %p1613_p5, %p2482_p1 }
  0x18   : > { %p1715_p13 = por %p1714_p12, %p1713_p11 }
  0x19   : > { %p2046_p7 = pneg %p2036_p6 }
  0x1b   : > { %p1708_p9 = pnand %p1706_p8, %p2046_p7 }
  0x1d   : > { %p1709_p10 = pneg %p1708_p9 }
  0x1f   : > { %p1716_p0 = pnand %p1715_p13, %p1709_p10 }
  0x21   : > { %1719 = shalt.err (!%p1716_p0)
}
  0x22   : > { %s1933_s13 = smov 128   ;;  %s1934_s14 = smov 8  }
  0x23   : > { %s2494_s2 = sld [smem:[#allocation20_spill]]  ;;  %s1731_s21 = scalar_lea.vmem %s2040_s26, 256 }
  0x24   : > { %p1732_p2 = scmp.ne.s32.totalorder %s2040_s26, %s1731_s21  ;;  %p1739_p9 = scmp.lt.s32.totalorder %s2040_s26, %s2040_s26 }
  0x25   : > { %p1740_p10 = scmp.lt.s32.totalorder %s1731_s21, %s1731_s21 }
  0x26   : > { %p1734_p5 = pnand %p1732_p2, %p2046_p7 }
  0x27   : > { %p1741_p11 = por %p1740_p10, %p1739_p9 }
  0x28   : > { %p1735_p8 = pneg %p1734_p5 }
  0x29   : > { %1616 = dma.hbm_to_vmem [thread:$0]  (!%p2036_p6), %s2494_s2, 2048, %s313_s22, [#allocation6], %s1933_s13, %s1933_s13, %s1934_s14  }
  0x2a   : > { %p1742_p12 = pnand %p1741_p11, %p1735_p8 }
  0x2c   : > { %1745 = shalt.err (!%p1742_p12)
}
  0x2d   : > { %s2495_s4 = sld [smem:[#allocation22_spill]]  ;;  %s1757_s22 = scalar_lea.vmem %s2042_s29, 256 }
  0x2e   : > { %p1758_p13 = scmp.ne.s32.totalorder %s2042_s29, %s1757_s22  ;;  %p1765_p5 = scmp.lt.s32.totalorder %s2042_s29, %s2042_s29 }
  0x2f   : > { %p1766_p8 = scmp.lt.s32.totalorder %s1757_s22, %s1757_s22 }
  0x30   : > { %p1760_p0 = pnand %p1758_p13, %p2046_p7 }
  0x31   : > { %p1767_p9 = por %p1766_p8, %p1765_p5 }
  0x32   : > { %p1761_p2 = pneg %p1760_p0 }
  0x33   : > { %1622 = dma.hbm_to_vmem [thread:$0]  (!%p2036_p6), %s2495_s4, 256, %s2040_s26, [#allocation9], %s1933_s13, %s1933_s13, %s1934_s14  }
  0x34   : > { %p1768_p10 = pnand %p1767_p9, %p1761_p2 }
  0x36   : > { %1771 = shalt.err (!%p1768_p10)
}
  0x37   : > { %s2496_s3 = sld [smem:[#allocation21_spill]]  ;;  %s1935_s26 = smov [#allocation10]  }
  0x38   : > { %s351_s16 = sshll.u32 %s1935_s26, 4  ;;  %s1936_s21 = smov [#allocation11]   ;;  %s352_s16 = int_to_ptr.vmem [resolvable:$true] %s351_s16 }
  0x39   : > { %s364_s25 = sshll.u32 %s1936_s21, 4  ;;  %s1783_s28 = scalar_lea.vmem %s352_s16, 256  ;;  %s365_s25 = int_to_ptr.vmem [resolvable:$true] %s364_s25 }
  0x3a   : > { %p1784_p11 = scmp.ne.s32.totalorder %s352_s16, %s1783_s28  ;;  %p1791_p0 = scmp.lt.s32.totalorder %s352_s16, %s352_s16 }
  0x3b   : > { %p1792_p2 = scmp.lt.s32.totalorder %s1783_s28, %s1783_s28 }
  0x3c   : > { %p1786_p12 = pnand %p1784_p11, %p2046_p7 }
  0x3d   : > { %1619 = dma.hbm_to_vmem [thread:$0]  (!%p2036_p6), %s2496_s3, 256, %s2042_s29, [#allocation6], %s1933_s13, %s1933_s13, %s1934_s14  }
  0x3e   : > { %p1787_p13 = pneg %p1786_p12  ;;  %p1793_p5 = por %p1792_p2, %p1791_p0 }
  0x40   : > { %p1794_p8 = pnand %p1793_p5, %p1787_p13 }
  0x42   : > { %1797 = shalt.err (!%p1794_p8)
}
  0x43   : > { %s2497_s5 = sld [smem:[#allocation23_spill]]  ;;  %s1809_s12 = scalar_lea.vmem %s365_s25, 2048 }
  0x44   : > { %p1810_p9 = scmp.ne.s32.totalorder %s365_s25, %s1809_s12  ;;  %p1817_p12 = scmp.lt.s32.totalorder %s365_s25, %s365_s25 }
  0x45   : > { %p1818_p0 = scmp.lt.s32.totalorder %s1809_s12, %s1809_s12 }
  0x46   : > { %p1812_p10 = pnand %p1810_p9, %p2046_p7 }
  0x47   : > { %p1819_p13 = por %p1818_p0, %p1817_p12 }
  0x48   : > { %p1813_p11 = pneg %p1812_p10 }
  0x49   : > { %1625 = dma.hbm_to_vmem [thread:$0]  (!%p2036_p6), %s2497_s5, 256, %s352_s16, [#allocation9], %s1933_s13, %s1933_s13, %s1934_s14  }
  0x4a   : > { %p1820_p2 = pnand %p1819_p13, %p1813_p11 }
  0x4c   : > { %1823 = shalt.err (!%p1820_p2)
}
  0x4d   : > { %s2498_s6 = sld [smem:[#allocation24_spill]]  ;;  %s1297_s27 = sadd.s32 4294967294, %s1928_s20  }
  0x4e   : > { %s2112_s30 = sadd.s32 1, %s1928_s20   ;;  %s37_s16 = sadd.s32 1, %s1924_s19 }
  0x4f   : > { %s34_s21 = ssub.s32 %s1928_s20, %s2112_s30  ;;  %p44_p7 = scmp.ne.s32.totalorder %s1924_s19, %s1920_s18 }
  0x50   : > { %p35_p5 = scmp.eq.s32.totalorder %s34_s21, 0  ;;  %p45_p8 = scmp.eq.s32.totalorder %s1928_s20, 0 }
  0x51   : > { %p50_p9 = scmp.ne.s32.totalorder %s1920_s18, %s1916_s17  ;;  %p284_p10 = scmp.eq.s32.totalorder %s2022_s23, 1 }
  0x52   : > { %s2124_s28 = scalar_select %p35_p5, %s1924_s19, %s37_s16  }
  0x53   : > { %1628 = dma.hbm_to_vmem [thread:$0]  (!%p2036_p6), %s2498_s6, 2048, %s365_s25, [#allocation12], %s1933_s13, %s1933_s13, %s1934_s14  }
  0x54   : > { %2499 = sst [smem:[#allocation19_spill]] %s2124_s28  ;;  %p46_p11 = por %p45_p8, %p44_p7 }
  0x55   : > { %p2128_p12 = por %p2482_p1, %p50_p9  ;;  %p2132_p6 = por %p284_p10, %p44_p7 }
  0x56   : > { %p290_p0 = scmp.eq.s32.totalorder %s1297_s27, 1  ;;  %p1642_p13 = scmp.lt.s32.totalorder %s1928_s20, 2 }
  0x57   : > { %s2500_s29 = scalar_select %p2128_p12, 1, 0 }
  0x58   : > { %s2501_s13 = scalar_select %p2132_p6, 1, 0 }
  0x59   : > { %s390_s14 = sand.u32 1, %s1924_s19   ;;  %p2138_p2 = por %p290_p0, %p50_p9 }
  0x5a   : > { %s1305_s22 = sshll.u32 %s390_s14, 3  ;;  %s1306_s12 = sshll.u32 %s1928_s20, 7 }
  0x5b   : > { %s2502_s25 = scalar_select %p2138_p2, 1, 0 }
  0x5c   : > { %s2146_s16 = scalar_lea.hbm %s2470_s0, %s1306_s12  ;;  %s394_s21 = scalar_lea.vmem [#allocation2], %s1305_s22 }
  0x5d   : > { %s401_s2 = sshll.u32 %s394_s21, 4  ;;  %p2148_p7 = pnand %p1642_p13, %p46_p11  ;;  %s402_s2 = int_to_ptr.vmem [resolvable:$true] %s401_s2 }
  0x5e   : > { %s391_s3 = scalar_lea.sflag [#allocation3], %s390_s14  ;;  %s1824_s4 = scalar_lea.hbm %s2146_s16, 128 }
  0x5f   : > { %p1825_p5 = scmp.ne.s32.totalorder %s2146_s16, %s1824_s4  ;;  %p1826_p8 = pneg %p2148_p7 }
  0x60   : > { %s1829_s26 = scalar_lea.hbm %s2470_s0, 256  ;;  %p1830_p11 = scmp.lt.s32.totalorder %s2146_s16, %s2470_s0 }
  0x61   : > { %p1827_p9 = pnand %p1826_p8, %p1825_p5  ;;  %p1831_p0 = scmp.lt.s32.totalorder %s1829_s26, %s1824_s4 }
  0x63   : > { %p1828_p10 = pneg %p1827_p9  ;;  %p1832_p13 = por %p1831_p0, %p1830_p11 }
  0x65   : > { %p1833_p4 = pnand %p1832_p13, %p1828_p10 }
  0x67   : > { %1836 = shalt.err (!%p1833_p4)
}
  0x68   : > { %s1837_s21 = scalar_lea.vmem %s402_s2, 128  ;;  %s1937_s14 = smov [#allocation2]  }
  0x69   : > { %p1838_p1 = scmp.ne.s32.totalorder %s402_s2, %s1837_s21  ;;  %s1842_s6 = sshll.u32 %s1937_s14, 4  ;;  %s1843_s6 = int_to_ptr.vmem [resolvable:$false] %s1842_s6 }
  0x6a   : > { %s1844_s28 = scalar_lea.vmem %s1843_s6, 256  ;;  %p1845_p5 = scmp.lt.s32.totalorder %s402_s2, %s1843_s6 }
  0x6b   : > { %p1840_p2 = pnand %p1838_p1, %p1826_p8  ;;  %p1846_p9 = scmp.lt.s32.totalorder %s1844_s28, %s1837_s21 }
  0x6d   : > { %p1841_p6 = pneg %p1840_p2  ;;  %p1847_p12 = por %p1846_p9, %p1845_p5 }
  0x6f   : > { %p1848_p3 = pnand %p1847_p12, %p1841_p6 }
  0x71   : > { %1851 = shalt.err (!%p1848_p3)
}
  0x72   : > { %1632 = dma.hbm_to_vmem [thread:$0]  (!%p2148_p7), %s2146_s16, 128, %s402_s2, %s391_s3  }
  0x73   : > { %p2504_p10 = scmp.ne.s32.totalorder %s2491_s24, 0 }
  0x74   : > { %s2169_s4 = sand.u32 (!%p2504_p10), 1, %s1920_s18   ;;  %p2505_p1 = scmp.ne.s32.totalorder (!%p2504_p10), %s2500_s29, 0 }
  0x75   : > { %410 = sbr.rel (%p2504_p10) target bundleno = 1920 (0x780), region = 64  ;;  %s1308_s5 = sshll.u32 (!%p2504_p10), %s2169_s4, 3 }
  0x76   : > { %s413_s6 = scalar_lea.sflag (!%p2504_p10), [#allocation3], %s2169_s4  ;;  %s2175_s28 = scalar_lea.vmem (!%p2504_p10), [#allocation2], %s1308_s5 }
  0x7a   : > { %1895 = dma.done.wait (%p2505_p1), %s413_s6, 128  }
  0x7b   : > { %1897 = vsyncadd (%p2505_p1), %s413_s6, 4294967168  ;;  %p2506_p3 = scmp.eq.s32.totalorder %s2022_s23, 0 }
  0x7d   : > { %1899 = dma.done.wait (%p2506_p3), [#allocation6], 2304   ;;  %p2507_p4 = pmov %p2506_p3 }
  0x7e   : > { %p2508_p12 = pmov %p2506_p3 }
  0x7f   : > { %1901 = vsyncadd (%p2507_p4), [#allocation6], 4294964992 }
  0x80   : > { %1903 = dma.done.wait (%p2508_p12), [#allocation9], 512   ;;  %p2509_p6 = pmov %p2506_p3 }
  0x81   : > { %p2510_p2 = pmov %p2506_p3 }
  0x82   : > { %1905 = vsyncadd (%p2509_p6), [#allocation9], 4294966784 }
  0x83   : > { %1907 = dma.done.wait (%p2510_p2), [#allocation12], 2048   ;;  %p2511_p7 = pmov %p2510_p2 }
  0x84   : > { %v1938_v0 = vmov 0.0   ;;  %vm1939_vm0 = vmmov 0   ;;  %v493_v1 = vld [vmem:[%s2471_s1 + $0x78] sm:$0xff]  ;;  %v492_v2 = vld [vmem:[%s2471_s1 + $0x70] sm:$0xff]  ;;  %v491_v3 = vld [vmem:[%s2471_s1 + $0x68] sm:$0xff]  ;;  %v494_v34 = vlaneseq  ;;  %vm730_vm1 = vcmask 130048  }
  0x85   : > { %1909 = vsyncadd (%p2511_p7), [#allocation12], 4294965248  ;;  %1409 = vmatprep.subr.mxu0 %v1938_v0  ;;  %1441 = vmatprep.mubr.msk.f32.mxu0 %vm1939_vm0, %v1938_v0  ;;  %v490_v4 = vld [vmem:[%s2471_s1 + $0x60] sm:$0xff]  ;;  %v583_v5 = vld [vmem:[#allocation5 + $0x78] sm:$0xff]  ;;  %vm1089_vm2 = vcmask 523264   ;;  %s1320_s24 = sshll.u32 %s2022_s23, 7 }
  0x86   : > { %1444 = vmatprep.subr.mxu1 %v1938_v0  ;;  %1476 = vmatprep.mubr.msk.f32.mxu1 %vm1939_vm0, %v1938_v0  ;;  %v489_v6 = vld [vmem:[%s2471_s1 + $0x58] sm:$0xff]  ;;  %v582_v7 = vld [vmem:[#allocation5 + $0x70] sm:$0xff]  ;;  %v488_v9 = vld [vmem:[%s2471_s1 + $0x50] sm:$0xff]  ;;  %v2282_v35 = vshrl.u32 %v494_v34, 7  ;;  %s474_s29 = scalar_lea.vmem [#allocation13], %s1308_s5  ;;  %s1177_s12 = scalar_lea.hbm %s2481_s11, %s1320_s24 }
  0x87   : > { %1410 = vmatpush3.msra.mxu0 %v493_v1  ;;  %1445 = vmatpush3.msra.mxu1 %v583_v5  ;;  %v581_v8 = vld [vmem:[#allocation5 + $0x68] sm:$0xff]  ;;  %v580_v10 = vld [vmem:[#allocation5 + $0x60] sm:$0xff]  ;;  %v487_v11 = vld [vmem:[%s2471_s1 + $0x48] sm:$0xff]  ;;  %s1179_s16 = sshll.u32 %s474_s29, 4  ;;  %s1166_s15 = scalar_lea.sflag [#allocation4], %s2169_s4  ;;  %s1180_s16 = int_to_ptr.vmem [resolvable:$true] %s1179_s16 }
  0x88   : > { %1411 = vmatprep.subr.mxu0 %v1938_v0  ;;  %1446 = vmatprep.subr.mxu1 %v1938_v0  ;;  %v579_v12 = vld [vmem:[#allocation5 + $0x58] sm:$0xff]  ;;  %v486_v13 = vld [vmem:[%s2471_s1 + $0x40] sm:$0xff]  ;;  %v485_v15 = vld [vmem:[%s2471_s1 + $0x38] sm:$0xff]  ;;  %v496_v36 = vsub.s32 0, %v2282_v35  ;;  %v586_v44 = vsub.s32 1, %v2282_v35  ;;  %s1852_s26 = scalar_lea.vmem %s1180_s16, 128 }
  0x89   : > { %1412 = vmatpush3.msra.mxu0 %v492_v2  ;;  %1447 = vmatpush3.msra.mxu1 %v582_v7  ;;  %v578_v14 = vld [vmem:[#allocation5 + $0x50] sm:$0xff]  ;;  %v577_v16 = vld [vmem:[#allocation5 + $0x48] sm:$0xff]  ;;  %v484_v17 = vld [vmem:[%s2471_s1 + $0x30] sm:$0xff]  ;;  %p1853_p8 = scmp.ne.s32.totalorder %s1180_s16, %s1852_s26  ;;  %p2512_p11 = scmp.ne.s32.totalorder %s2501_s13, 0 }
  0x8a   : > { %1413 = vmatprep.subr.mxu0 %v1938_v0  ;;  %1448 = vmatprep.subr.mxu1 %v1938_v0  ;;  %v576_v18 = vld [vmem:[#allocation5 + $0x40] sm:$0xff]  ;;  %v483_v19 = vld [vmem:[%s2471_s1 + $0x28] sm:$0xff]  ;;  %v482_v21 = vld [vmem:[%s2471_s1 + $0x20] sm:$0xff]  ;;  %s1940_s22 = smov [#allocation13]  }
  0x8b   : > { %1414 = vmatpush3.msra.mxu0 %v491_v3  ;;  %1449 = vmatpush3.msra.mxu1 %v581_v8  ;;  %v575_v20 = vld [vmem:[#allocation5 + $0x38] sm:$0xff]  ;;  %v574_v22 = vld [vmem:[#allocation5 + $0x30] sm:$0xff]  ;;  %v481_v23 = vld [vmem:[%s2471_s1 + $0x18] sm:$0xff]  ;;  %p1854_p0 = pnand %p1853_p8, %p2512_p11  ;;  %s1856_s23 = sshll.u32 %s1940_s22, 4  ;;  %s1857_s23 = int_to_ptr.vmem [resolvable:$false] %s1856_s23 }
  0x8c   : > { %1415 = vmatprep.subr.mxu0 %v1938_v0  ;;  %1450 = vmatprep.subr.mxu1 %v1938_v0  ;;  %v573_v24 = vld [vmem:[#allocation5 + $0x28] sm:$0xff]  ;;  %v480_v25 = vld [vmem:[%s2471_s1 + $0x10] sm:$0xff]  ;;  %v479_v27 = vld [vmem:[%s2471_s1 + $0x8] sm:$0xff]  ;;  %s1858_s5 = scalar_lea.vmem %s1857_s23, 256  ;;  %p1859_p5 = scmp.lt.s32.totalorder %s1180_s16, %s1857_s23 }
  0x8d   : > { %1416 = vmatpush3.msra.mxu0 %v490_v4  ;;  %1451 = vmatpush3.msra.mxu1 %v580_v10  ;;  %v572_v26 = vld [vmem:[#allocation5 + $0x20] sm:$0xff]  ;;  %v571_v28 = vld [vmem:[#allocation5 + $0x18] sm:$0xff]  ;;  %v478_v29 = vld [vmem:[%s2471_s1] sm:$0xff]  ;;  %p1855_p13 = pneg %p1854_p0  ;;  %p1860_p9 = scmp.lt.s32.totalorder %s1858_s5, %s1852_s26 }
  0x8e   : > { %1417 = vmatprep.subr.mxu0 %v1938_v0  ;;  %1452 = vmatprep.subr.mxu1 %v1938_v0  ;;  %v477_v30 = vld [vmem:[%s2175_s28] sm:$0xff]  ;;  %v569_v32 = vld [vmem:[#allocation5 + $0x8] sm:$0xff]  ;;  %v568_v33 = vld [vmem:[#allocation5] sm:$0xff] }
  0x8f   : > { %1418 = vmatpush3.msra.mxu0 %v489_v6  ;;  %1453 = vmatpush3.msra.mxu1 %v579_v12  ;;  %v570_v31 = vld [vmem:[#allocation5 + $0x10] sm:$0xff]  ;;  %v659_v41 = vld [vmem:[#allocation7 + $0x8] sm:$0xff]  ;;  %v658_v43 = vld [vmem:[#allocation7] sm:$0xff]  ;;  %p1861_p10 = por %p1860_p9, %p1859_p5 }
  0x90   : > { %1419 = vmatprep.subr.mxu0 %v1938_v0  ;;  %1454 = vmatprep.subr.mxu1 %v1938_v0  ;;  %v2288_v37 = vld [vmem:[%s2479_s9] sm:$0xf]  ;;  %v738_v52 = vld [vmem:[#allocation10 + $0x8] sm:$0xff]  ;;  %v737_v53 = vld [vmem:[#allocation10] sm:$0xff] }
  0x91   : > { %1420 = vmatpush3.msra.mxu0 %v488_v9  ;;  %1455 = vmatpush3.msra.mxu1 %v578_v14  ;;  %v497_v38 = vrot.slane %v2288_v37, %v496_v36  ;;  %v587_v45 = vrot.slane %v2288_v37, %v586_v44  ;;  %v819_v58 = vld [vmem:[#allocation8 + $0x8] sm:$0xff]  ;;  %v818_v59 = vld [vmem:[#allocation8] sm:$0xff]  ;;  %v908_v60 = vld [vmem:[#allocation11 + $0x78] sm:$0xff]  ;;  %p1862_p1 = pnand %p1861_p10, %p1855_p13 }
  0x92   : > { %1421 = vmatprep.subr.mxu0 %v1938_v0  ;;  %1456 = vmatprep.subr.mxu1 %v1938_v0  ;;  %v907_v61 = vld [vmem:[#allocation11 + $0x70] sm:$0xff]  ;;  %v906_v62 = vld [vmem:[#allocation11 + $0x68] sm:$0xff]  ;;  %v905_v63 = vld [vmem:[#allocation11 + $0x60] sm:$0xff] }
  0x93   : > { %1422 = vmatpush3.msra.mxu0 %v487_v11  ;;  %1457 = vmatpush3.msra.mxu1 %v577_v16  ;;  %v904_v1 = vld [vmem:[#allocation11 + $0x58] sm:$0xff]  ;;  %v903_v2 = vld [vmem:[#allocation11 + $0x50] sm:$0xff]  ;;  %v902_v3 = vld [vmem:[#allocation11 + $0x48] sm:$0xff] }
  0x94   : > { %1423 = vmatprep.subr.mxu0 %v1938_v0  ;;  %1458 = vmatprep.subr.mxu1 %v1938_v0  ;;  %v901_v4 = vld [vmem:[#allocation11 + $0x40] sm:$0xff]  ;;  %v900_v5 = vld [vmem:[#allocation11 + $0x38] sm:$0xff]  ;;  %v899_v6 = vld [vmem:[#allocation11 + $0x30] sm:$0xff] }
  0x95   : > { %1424 = vmatpush3.msra.mxu0 %v486_v13  ;;  %1459 = vmatpush3.msra.mxu1 %v576_v18  ;;  %v898_v7 = vld [vmem:[#allocation11 + $0x28] sm:$0xff]  ;;  %v897_v8 = vld [vmem:[#allocation11 + $0x20] sm:$0xff]  ;;  %v896_v9 = vld [vmem:[#allocation11 + $0x18] sm:$0xff] }
  0x96   : > { %1425 = vmatprep.subr.mxu0 %v1938_v0  ;;  %1460 = vmatprep.subr.mxu1 %v1938_v0  ;;  %v895_v10 = vld [vmem:[#allocation11 + $0x10] sm:$0xff]  ;;  %v894_v11 = vld [vmem:[#allocation11 + $0x8] sm:$0xff] }
  0x97   : > { %1426 = vmatpush3.msra.mxu0 %v485_v15  ;;  %1461 = vmatpush3.msra.mxu1 %v575_v20  ;;  %v893_v20 = vld [vmem:[#allocation11] sm:$0xff]  ;;  %v1082_v44 = vld [vmem:[%s2478_s8 + $0x28] sm:$0xff] }
  0x98   : > { %1427 = vmatprep.subr.mxu0 %v1938_v0  ;;  %1462 = vmatprep.subr.mxu1 %v1938_v0 }
  0x99   : > { %1428 = vmatpush3.msra.mxu0 %v484_v17  ;;  %1463 = vmatpush3.msra.mxu1 %v574_v22  ;;  %v998_v22 = vld [vmem:[%s2477_s7 + $0x70] sm:$0xff] }
  0x9a   : > { %1429 = vmatprep.subr.mxu0 %v1938_v0  ;;  %1464 = vmatprep.subr.mxu1 %v1938_v0 }
  0x9b   : > { %1430 = vmatpush3.msra.mxu0 %v483_v19  ;;  %1465 = vmatpush3.msra.mxu1 %v573_v24  ;;  %v996_v24 = vld [vmem:[%s2477_s7 + $0x60] sm:$0xff] }
  0x9c   : > { %1431 = vmatprep.subr.mxu0 %v1938_v0  ;;  %1466 = vmatprep.subr.mxu1 %v1938_v0 }
  0x9d   : > { %1432 = vmatpush3.msra.mxu0 %v482_v21  ;;  %1467 = vmatpush3.msra.mxu1 %v572_v26  ;;  %v999_v21 = vld [vmem:[%s2477_s7 + $0x78] sm:$0xff]  ;;  %v994_v26 = vld [vmem:[%s2477_s7 + $0x50] sm:$0xff] }
  0x9e   : > { %1433 = vmatprep.subr.mxu0 %v1938_v0  ;;  %1468 = vmatprep.subr.mxu1 %v1938_v0 }
  0x9f   : > { %1434 = vmatpush3.msra.mxu0 %v481_v23  ;;  %1469 = vmatpush3.msra.mxu1 %v571_v28  ;;  %v997_v23 = vld [vmem:[%s2477_s7 + $0x68] sm:$0xff]  ;;  %v992_v28 = vld [vmem:[%s2477_s7 + $0x40] sm:$0xff] }
  0xa0   : > { %1435 = vmatprep.subr.mxu0 %v1938_v0  ;;  %1470 = vmatprep.subr.mxu1 %v1938_v0 }
  0xa1   : > { %1436 = vmatpush3.msra.mxu0 %v480_v25  ;;  %1471 = vmatpush3.msra.mxu1 %v570_v31  ;;  %v995_v25 = vld [vmem:[%s2477_s7 + $0x58] sm:$0xff]  ;;  %v989_v31 = vld [vmem:[%s2477_s7 + $0x28] sm:$0xff] }
  0xa2   : > { %1437 = vmatprep.subr.mxu0 %v1938_v0  ;;  %1472 = vmatprep.subr.mxu1 %v1938_v0 }
  0xa3   : > { %1438 = vmatpush3.msra.mxu0 %v479_v27  ;;  %1473 = vmatpush3.msra.mxu1 %v569_v32  ;;  %v993_v27 = vld [vmem:[%s2477_s7 + $0x48] sm:$0xff]  ;;  %v988_v32 = vld [vmem:[%s2477_s7 + $0x20] sm:$0xff] }
  0xa4   : > { %1439 = vmatprep.subr.mxu0 %v1938_v0  ;;  %1474 = vmatprep.subr.mxu1 %v1938_v0 }
  0xa5   : > { %1440 = vmatpush3.msra.mxu0 %v478_v29  ;;  %1475 = vmatpush3.msra.mxu1 %v568_v33  ;;  %v991_v29 = vld [vmem:[%s2477_s7 + $0x38] sm:$0xff] }
  0xa6   : > { %1442 = vmatmul.mubr.f32.vlgmr.msra.gmra.mxu0 %v477_v30  ;;  %1500 = vmatprep.subr.mxu0 %v1938_v0  ;;  %v990_v30 = vld [vmem:[%s2477_s7 + $0x30] sm:$0xff]  ;;  %v987_v33 = vld [vmem:[%s2477_s7 + $0x18] sm:$0xff] }
  0xa7   : > { %1532 = vmatprep.mubr.msk.f32.mxu0 %vm1939_vm0, %v1938_v0  ;;  %1479 = vmatprep.subr.mxu1 %v1938_v0 }
  0xa8   : > { %1501 = vmatpush3.msra.mxu0 %v908_v60  ;;  %v1087_v60 = vsub.s32 3, %v2282_v35 }
  0xa9   : > { %1502 = vmatprep.subr.mxu0 %v1938_v0 }
  0xaa   : > { %1503 = vmatpush3.msra.mxu0 %v907_v61 }
  0xab   : > { %1504 = vmatprep.subr.mxu0 %v1938_v0 }
  0xac   : > { %1505 = vmatpush3.msra.mxu0 %v906_v62 }
  0xad   : > { %1506 = vmatprep.subr.mxu0 %v1938_v0 }
  0xae   : > { %1507 = vmatpush3.msra.mxu0 %v905_v63 }
  0xaf   : > { %1508 = vmatprep.subr.mxu0 %v1938_v0 }
  0xb0   : > { %1509 = vmatpush3.msra.mxu0 %v904_v1 }
  0xb1   : > { %1510 = vmatprep.subr.mxu0 %v1938_v0 }
  0xb2   : > { %1511 = vmatpush3.msra.mxu0 %v903_v2 }
  0xb3   : > { %1512 = vmatprep.subr.mxu0 %v1938_v0 }
  0xb4   : > { %1513 = vmatpush3.msra.mxu0 %v902_v3 }
  0xb5   : > { %1514 = vmatprep.subr.mxu0 %v1938_v0 }
  0xb6   : > { %1515 = vmatpush3.msra.mxu0 %v901_v4 }
  0xb7   : > { %1516 = vmatprep.subr.mxu0 %v1938_v0 }
  0xb8   : > { %1517 = vmatpush3.msra.mxu0 %v900_v5 }
  0xb9   : > { %1518 = vmatprep.subr.mxu0 %v1938_v0 }
  0xba   : > { %1519 = vmatpush3.msra.mxu0 %v899_v6 }
  0xbb   : > { %1520 = vmatprep.subr.mxu0 %v1938_v0 }
  0xbc   : > { %1521 = vmatpush3.msra.mxu0 %v898_v7 }
  0xbd   : > { %1522 = vmatprep.subr.mxu0 %v1938_v0 }
  0xbe   : > { %1523 = vmatpush3.msra.mxu0 %v897_v8 }
  0xbf   : > { %1524 = vmatprep.subr.mxu0 %v1938_v0 }
  0xc0   : > { %1525 = vmatpush3.msra.mxu0 %v896_v9 }
  0xc1   : > { %1526 = vmatprep.subr.mxu0 %v1938_v0 }
  0xc2   : > { %1527 = vmatpush3.msra.mxu0 %v895_v10 }
  0xc3   : > { %1528 = vmatprep.subr.mxu0 %v1938_v0 }
  0xc4   : > { %1529 = vmatpush3.msra.mxu0 %v894_v11 }
  0xc5   : > { %1530 = vmatprep.subr.mxu0 %v1938_v0 }
  0xc6   : > { %1531 = vmatpush3.msra.mxu0 %v893_v20 }
  0xc7   : > { %1570 = vmatprep.subr.mxu0 %v1938_v0 }
 0x166   : > { %v564_v39 = vpop.f32.mrf.mxu0 }
 0x167   : > { %v2291_v40 = vadd.f32 %v564_v39, %v497_v38  ;;  %v986_v38 = vld [vmem:[%s2477_s7 + $0x10] sm:$0xff]  ;;  %v985_v39 = vld [vmem:[%s2477_s7 + $0x8] sm:$0xff] }
 0x168   : > { %v1443_v42 = vpop.f32.mrf.mxu0 }
 0x169   : > { %1477 = vmatmul.mubr.f32.vlgmr.msra.gmra.mxu1 %v2291_v40  ;;  %v1084_v42 = vld [vmem:[%s2478_s8 + $0x38] sm:$0xff] }
 0x16a   : > { %1480 = vmatpush3.xpose.msra.mxu1 %v659_v41  ;;  %1483 = vmatprep.mubr.msk.f32.mxu1 %vm1939_vm0, %v1938_v0  ;;  %v984_v41 = vld [vmem:[%s2477_s7] sm:$0xff] }
 0x16b   : > { %1481 = vmatprep.subr.mxu1 %v1938_v0 }
 0x16e   : > { %1482 = vmatpush3.xpose.msra.mxu1 %v658_v43  ;;  %v1083_v43 = vld [vmem:[%s2478_s8 + $0x30] sm:$0xff] }
 0x16f   : > { %1486 = vmatprep.subr.mxu1 %v1938_v0 }
 0x229   : > { %v654_v46 = vpop.f32.mrf.mxu1 }
 0x22a   : > { %v655_v47 = vadd.f32 %v654_v46, %v587_v45  ;;  %v1081_v45 = vld [vmem:[%s2478_s8 + $0x20] sm:$0xff]  ;;  %v1080_v46 = vld [vmem:[%s2478_s8 + $0x18] sm:$0xff] }
 0x22b   : > { %v1478_v48 = vpop.f32.mrf.mxu1 }
 0x22c   : > { %1484 = vmatmul.mubr.f32.vlgmr.msra.gmra.mxu1 %v655_v47  ;;  %v911_v47 = vsub.s32 2, %v2282_v35 }
 0x22d   : > { %1490 = vmatprep.mubr.msk.f32.mxu1 %vm1939_vm0, %v1938_v0  ;;  %1487 = vmatpush3.msra.mxu1 %v738_v52 }
 0x22e   : > { %1488 = vmatprep.subr.mxu1 %v1938_v0  ;;  %v912_v48 = vrot.slane %v2288_v37, %v911_v47 }
 0x22f   : > { %1489 = vmatpush3.msra.mxu1 %v737_v53  ;;  %v1079_v53 = vld [vmem:[%s2478_s8 + $0x10] sm:$0xff] }
 0x230   : > { %1493 = vmatprep.subr.mxu1 %v1938_v0 }
 0x2ec   : > { %v726_v49 = vpop.f32.mrf.mxu1 }
 0x2ed   : > { %v731_v50 = vsel %vm730_vm1, %v726_v49, -inf }
 0x2ee   : > { %v1485_v51 = vpop.f32.mrf.mxu1  ;;  %732 = vmax.xlane.f32.xlu0 %v731_v50 }
 0x377   : > { %v733_v54 = vpop.xlane.xlu0 %732 }
 0x378   : > { %v734_v55 = vsub.f32 %v726_v49, %v733_v54  ;;  %v1078_v54 = vld [vmem:[%s2478_s8 + $0x8] sm:$0xff] }
 0x37a   : > { %v735_v56 = vmul.f32 1.442695, %v734_v55  ;;  %v1317_v55 = vld [vmem:[%s2480_s10] ss:$0 sm:$0xff] }
 0x37c   : > { %1690 = vpow2.f32 %v735_v56 }
 0x389   : > { %v1691_v57 = vpop.eup %1690 }
 0x38a   : > { %1491 = vmatmul.mubr.msk.f32.vlgmr.msra.gmra.mxu1 %vm730_vm1, %v1691_v57 }
 0x38b   : > { %1497 = vmatprep.mubr.msk.f32.mxu1 %vm1939_vm0, %v1938_v0  ;;  %1494 = vmatpush3.msra.mxu1 %v819_v58 }
 0x38c   : > { %1495 = vmatprep.subr.mxu1 %v1938_v0 }
 0x38d   : > { %1496 = vmatpush3.msra.mxu1 %v818_v59 }
 0x38e   : > { %1535 = vmatprep.subr.mxu1 %v1938_v0 }
 0x44a   : > { %v808_v12 = vpop.f32.mrf.mxu1 }
 0x44b   : > { %v812_v13 = vmax.f32 %v808_v12, 1e-30 }
 0x44c   : > { %v1492_v14 = vpop.f32.mrf.mxu1 }
 0x44d   : > { %1692 = vrcp.f32 %v812_v13 }
 0x45a   : > { %v1693_v15 = vpop.eup %1692 }
 0x45b   : > { %v814_v16 = vmul.f32 %v1693_v15, %v812_v13 }
 0x45d   : > { %v815_v17 = vsub.f32 2.0, %v814_v16 }
 0x45f   : > { %v816_v18 = vmul.f32 %v1693_v15, %v815_v17 }
 0x461   : > { %v817_v19 = vmul.f32 %v1691_v57, %v816_v18 }
 0x463   : > { %1498 = vmatmul.mubr.msk.f32.vlgmr.msra.gmra.mxu1 %vm730_vm1, %v817_v19 }
 0x464   : > { %1567 = vmatprep.mubr.msk.f32.mxu1 %vm1939_vm0, %v1938_v0  ;;  %1536 = vmatpush3.msra.mxu1 %v999_v21 }
 0x465   : > { %1537 = vmatprep.subr.mxu1 %v1938_v0 }
 0x466   : > { %1538 = vmatpush3.msra.mxu1 %v998_v22 }
 0x467   : > { %1539 = vmatprep.subr.mxu1 %v1938_v0 }
 0x468   : > { %1540 = vmatpush3.msra.mxu1 %v997_v23 }
 0x469   : > { %1541 = vmatprep.subr.mxu1 %v1938_v0 }
 0x46a   : > { %1542 = vmatpush3.msra.mxu1 %v996_v24 }
 0x46b   : > { %1543 = vmatprep.subr.mxu1 %v1938_v0 }
 0x46c   : > { %1544 = vmatpush3.msra.mxu1 %v995_v25 }
 0x46d   : > { %1545 = vmatprep.subr.mxu1 %v1938_v0 }
 0x46e   : > { %1546 = vmatpush3.msra.mxu1 %v994_v26 }
 0x46f   : > { %1547 = vmatprep.subr.mxu1 %v1938_v0 }
 0x470   : > { %1548 = vmatpush3.msra.mxu1 %v993_v27 }
 0x471   : > { %1549 = vmatprep.subr.mxu1 %v1938_v0 }
 0x472   : > { %1550 = vmatpush3.msra.mxu1 %v992_v28 }
 0x473   : > { %1551 = vmatprep.subr.mxu1 %v1938_v0 }
 0x474   : > { %1552 = vmatpush3.msra.mxu1 %v991_v29 }
 0x475   : > { %1553 = vmatprep.subr.mxu1 %v1938_v0 }
 0x476   : > { %1554 = vmatpush3.msra.mxu1 %v990_v30 }
 0x477   : > { %1555 = vmatprep.subr.mxu1 %v1938_v0 }
 0x478   : > { %1556 = vmatpush3.msra.mxu1 %v989_v31 }
 0x479   : > { %1557 = vmatprep.subr.mxu1 %v1938_v0 }
 0x47a   : > { %1558 = vmatpush3.msra.mxu1 %v988_v32 }
 0x47b   : > { %1559 = vmatprep.subr.mxu1 %v1938_v0 }
 0x47c   : > { %1560 = vmatpush3.msra.mxu1 %v987_v33 }
 0x47d   : > { %1561 = vmatprep.subr.mxu1 %v1938_v0 }
 0x47e   : > { %1562 = vmatpush3.msra.mxu1 %v986_v38 }
 0x47f   : > { %1563 = vmatprep.subr.mxu1 %v1938_v0 }
 0x480   : > { %1564 = vmatpush3.msra.mxu1 %v985_v39 }
 0x481   : > { %1565 = vmatprep.subr.mxu1 %v1938_v0 }
 0x482   : > { %1566 = vmatpush3.msra.mxu1 %v984_v41 }
 0x523   : > { %v889_v34 = vpop.f32.mrf.mxu1 }
 0x524   : > { %1533 = vmatmul.mubr.f32.vlgmr.msra.gmra.mxu0 %v889_v34 }
 0x525   : > { %v1499_v36 = vpop.f32.mrf.mxu1  ;;  %1586 = vmatprep.mubr.msk.f32.mxu0 %vm1939_vm0, %v1938_v0  ;;  %1571 = vmatpush3.msra.mxu0 %v1084_v42 }
 0x526   : > { %1572 = vmatprep.subr.mxu0 %v1938_v0 }
 0x527   : > { %1573 = vmatpush3.msra.mxu0 %v1083_v43 }
 0x528   : > { %1574 = vmatprep.subr.mxu0 %v1938_v0 }
 0x529   : > { %1575 = vmatpush3.msra.mxu0 %v1082_v44 }
 0x52a   : > { %1576 = vmatprep.subr.mxu0 %v1938_v0 }
 0x52b   : > { %1577 = vmatpush3.msra.mxu0 %v1081_v45 }
 0x52c   : > { %1578 = vmatprep.subr.mxu0 %v1938_v0 }
 0x52d   : > { %1579 = vmatpush3.msra.mxu0 %v1080_v46 }
 0x52e   : > { %1580 = vmatprep.subr.mxu0 %v1938_v0 }
 0x52f   : > { %1581 = vmatpush3.msra.mxu0 %v1079_v53 }
 0x530   : > { %1582 = vmatprep.subr.mxu0 %v1938_v0 }
 0x531   : > { %1583 = vmatpush3.msra.mxu0 %v1078_v54 }
 0x532   : > { %1584 = vmatprep.subr.mxu0 %v1938_v0  ;;  %v1088_v0 = vrot.slane %v2288_v37, %v1087_v60 }
 0x5e4   : > { %v979_v49 = vpop.f32.mrf.mxu0 }
 0x5e5   : > { %v980_v50 = vadd.f32 %v979_v49, %v912_v48 }
 0x5e6   : > { %v1534_v51 = vpop.f32.mrf.mxu0 }
 0x5e7   : > { %v983_v52 = vadd.f32 %v980_v50, %v2291_v40  ;;  %v1077_v40 = vld [vmem:[%s2478_s8] sm:$0xff] }
 0x5e8   : > { %1585 = vmatpush3.msra.mxu0 %v1077_v40 }
 0x5e9   : > { %1568 = vmatmul.mubr.f32.vlgmr.msra.gmra.mxu1 %v983_v52 }
 0x6a9   : > { %v1072_v56 = vpop.f32.mrf.mxu1 }
 0x6aa   : > { %v1073_v57 = vadd.f32 %v1317_v55, %v1072_v56 }
 0x6ab   : > { %v1569_v58 = vpop.f32.mrf.mxu1 }
 0x6ac   : > { %v1076_v59 = vmax.f32 %v1073_v57, 0.0 }
 0x6ae   : > { %1587 = vmatmul.mubr.msk.f32.vlgmr.msra.gmra.mxu0 %vm1089_vm2, %v1076_v59 }
 0x76e   : > { %v1159_v61 = vpop.f32.mrf.mxu0 }
 0x76f   : > { %v1160_v62 = vadd.f32 %v1159_v61, %v1088_v0 }
 0x770   : > { %v1588_v63 = vpop.f32.mrf.mxu0 }
 0x771   : > { %v1163_v1 = vadd.f32 %v1160_v62, %v983_v52 }
 0x773   : > { %1164 = vst [vmem:[%s474_s29] sm:$0xff] %v1163_v1 }
 0x774   : > { %1865 = shalt.err (!%p1862_p1)
}
 0x775   : > { %s1866_s21 = scalar_lea.hbm %s1177_s12, 128  ;;  %s1870_s6 = scalar_lea.hbm %s2481_s11, 256 }
 0x776   : > { %p1867_p3 = scmp.ne.s32.totalorder %s1177_s12, %s1866_s21  ;;  %p1871_p6 = scmp.lt.s32.totalorder %s1177_s12, %s2481_s11 }
 0x777   : > { %p1872_p2 = scmp.lt.s32.totalorder %s1870_s6, %s1866_s21 }
 0x778   : > { %p1868_p4 = pnand %p1867_p3, %p2512_p11 }
 0x779   : > { %p1873_p7 = por %p1872_p2, %p1871_p6 }
 0x77a   : > { %p1869_p12 = pneg %p1868_p4 }
 0x77c   : > { %p1874_p8 = pnand %p1873_p7, %p1869_p12 }
 0x77e   : > { %1877 = shalt.err (!%p1874_p8)
}
 0x77f   : > { %1611 = dma.vmem_to_hbm [thread:$0]  (%p2512_p11), %s1180_s16, 128, %s1177_s12, %s1166_s15  }
 0x780 PF: > { %s1191_s24 = sand.u32 1, %s1916_s17   ;;  %p2513_p0 = scmp.ne.s32.totalorder %s2502_s25, 0 }
 0x781   : > { %p2514_p13 = scmp.ge.s32.totalorder %s1928_s20, 2  ;;  %s1192_s29 = scalar_lea.sflag [#allocation4], %s1191_s24 }
 0x783   : > { %p1634_p5 = pnand %p2514_p13, %p2513_p0 }
 0x785   : > { %p1635_p9 = pneg %p1634_p5 }
 0x787   : > { %1911 = dma.done.wait (%p1635_p9), %s1192_s29, 128  }
 0x788   : > { %1913 = vsyncadd (%p1635_p9), %s1192_s29, 4294967168  ;;  %s2515_s27 = sld [smem:[#allocation19_spill]]  ;;  %p27_p10 = scmp.ge.s32.totalorder %s2112_s30, 4  }
 0x789   : > { %s2516_s17 = smov %s1920_s18  ;;  %s2517_s18 = smov %s1924_s19 }
 0x78a   : > { %s2519_s20 = smov %s2112_s30  ;;  %29 = sbr.rel (!%p27_p10) target bundleno = 14 (0xe), region = 129 }
 0x78e   : > { %s2518_s19 = smov %s2515_s27 }
 0x78f   :  { %1197 = vsyncpa [#allocation3], 1 }
 0x790   :  { %1199 = vsyncpa [#allocation3 + $0x1], 1 }
 0x791   :  { %1200 = vsyncpa [#allocation6], 1 }
 0x792   :  { %1201 = vsyncpa [#allocation9], 1 }
 0x793   :  { %1202 = vsyncpa [#allocation12], 1 }
 0x794   :  { %1203 = vsyncpa [#allocation4], 1 }
 0x795   :  { %1205 = vsyncpa [#allocation4 + $0x1], 1 }

</bundles_post_ra>
